<compile_context>
chip_gen: v7x
topology: tpu7x:2x2x1
jax: 0.10.0
libtpu: 0.0.40
codegen_flags: <defaults>
</compile_context>

<pallas_src>
from functools import partial

import jax
import jax.numpy as jnp
import numpy as np
from jax.experimental import pallas as pl
from jax.experimental.pallas import tpu as pltpu

NUM_HEADS = 8


def self_attention_kernel(x_ref, wq_ref, wk_ref, wv_ref, wp_ref, b_ref, o_ref,
                          *, num_heads, matmul_dtype):
    """One grid step: full attention for `Bt` batch rows, all heads batched."""
    Bt, N, C = x_ref.shape
    H = num_heads
    md = matmul_dtype

    # Fold (batch_tile, head) into one leading batch axis so every matmul is a
    # canonical (BH, M, K) @ (BH, K, L) batched MXU contraction — no transposes,
    # no per-head slicing, no concatenation anywhere in the kernel.
    x = x_ref[...].astype(md)                                       # (Bt, N, C)
    xb = jnp.broadcast_to(x[:, None], (Bt, H, N, C)).reshape(Bt * H, N, C)

    def per_batch(w_ref):  # (H, K, L) -> (Bt*H, K, L); weights stay VMEM-resident
        w = w_ref[...]
        return jnp.broadcast_to(w[None], (Bt,) + w.shape).reshape((Bt * H,) + w.shape[1:])

    wq = per_batch(wq_ref)                       # (Bt*H, C, hd), qk-scale folded in
    wk = per_batch(wk_ref)                       # (Bt*H, C, hd)
    wv = per_batch(wv_ref)                       # (Bt*H, C, hd)
    wp = per_batch(wp_ref)                       # (Bt*H, hd, C)

    # Q/K/V projections (head-batched, f32 accumulation on the MXU).
    q = jnp.einsum('bnc,bcd->bnd', xb, wq, preferred_element_type=jnp.float32)
    k = jnp.einsum('bnc,bcd->bnd', xb, wk, preferred_element_type=jnp.float32)
    v = jnp.einsum('bnc,bcd->bnd', xb, wv, preferred_element_type=jnp.float32)

    # attn = softmax(q @ k^T); softmax math stays in f32 on every TPU generation.
    s = jnp.einsum('bnd,bmd->bnm', q.astype(md), k.astype(md),
                   preferred_element_type=jnp.float32)              # (Bt*H, N, N)
    s = s - jnp.max(s, axis=-1, keepdims=True)
    p = jnp.exp(s)
    p = p * pl.reciprocal(jnp.sum(p, axis=-1, keepdims=True), approx=True)

    # context = attn @ v   (attn cast back to the matmul dtype, as .type_as(x)).
    ctx = jnp.einsum('bnm,bmd->bnd', p.astype(md), v.astype(md),
                     preferred_element_type=jnp.float32)            # (Bt*H, N, hd)

    # Output projection: out = sum_h ctx_h @ Wp_h + b   (no head concat needed).
    oh = jnp.einsum('bnd,bdc->bnc', ctx.astype(md), wp,
                    preferred_element_type=jnp.float32)             # (Bt*H, N, C)
    out = oh.reshape(Bt, H, N, C).sum(axis=1) + b_ref[...]          # (Bt, N, C)
    o_ref[...] = out.astype(o_ref.dtype)


def self_attention(x, w_qkv, w_proj, b_proj, *, num_heads=NUM_HEADS,
                   batch_tile=None, matmul_dtype=None):
    """x: (B, N, C).  w_qkv: (3C, C), w_proj: (C, C), b_proj: (C,)  (nn.Linear (out, in))."""
    B, N, C = x.shape
    H = num_heads
    assert C % H == 0
    hd = C // H
    scale = float(hd) ** -0.5
    md = x.dtype if matmul_dtype is None else matmul_dtype

    # ---- host-side parameter prep (done once, outside the kernel) -------------
    # Split the fused QKV weight, transpose to (in, out) layout, split per head
    # as (H, C, hd), and fold the 1/sqrt(head_dim) scale into the Q weights.
    wq, wk, wv = w_qkv[:C], w_qkv[C:2 * C], w_qkv[2 * C:]
    wq_h = (wq.reshape(H, hd, C) * scale).transpose(0, 2, 1).astype(md)  # (H, C, hd)
    wk_h = wk.reshape(H, hd, C).transpose(0, 2, 1).astype(md)            # (H, C, hd)
    wv_h = wv.reshape(H, hd, C).transpose(0, 2, 1).astype(md)            # (H, C, hd)
    # Output projection split per head: out = sum_h ctx_h @ wp_h[h] + b.
    wp_h = w_proj.T.reshape(H, hd, C).astype(md)                         # (H, hd, C)
    b2 = b_proj.reshape(1, C).astype(jnp.float32)

    bt = B if batch_tile is None else batch_tile
    assert B % bt == 0, "batch_tile must divide the batch size"

    kernel = partial(self_attention_kernel, num_heads=H, matmul_dtype=md)
    return pl.pallas_call(
        kernel,
        out_shape=jax.ShapeDtypeStruct((B, N, C), x.dtype),
        grid=(B // bt,),
        in_specs=[
            pl.BlockSpec((bt, N, C), lambda b: (b, 0, 0)),     # x: one batch tile
            pl.BlockSpec((H, C, hd), lambda b: (0, 0, 0)),     # Wq (resident)
            pl.BlockSpec((H, C, hd), lambda b: (0, 0, 0)),     # Wk (resident)
            pl.BlockSpec((H, C, hd), lambda b: (0, 0, 0)),     # Wv (resident)
            pl.BlockSpec((H, hd, C), lambda b: (0, 0, 0)),     # Wproj (resident)
            pl.BlockSpec((1, C), lambda b: (0, 0)),            # proj bias
        ],
        out_specs=pl.BlockSpec((bt, N, C), lambda b: (b, 0, 0)),
        compiler_params=pltpu.CompilerParams(
            dimension_semantics=("parallel",)),
    )(x, wq_h, wk_h, wv_h, wp_h, b2)


def reference(x, w_qkv, w_proj, b_proj, num_heads=NUM_HEADS):
    """Pure-JAX transcription of the PyTorch forward (for verification)."""
    B, N, C = x.shape
    hd = C // num_heads
    scale = hd ** (-0.5)
    qkv = x @ w_qkv.T                                            # (B, N, 3C)
    qkv = qkv.reshape(B, N, 3, num_heads, hd).transpose(2, 0, 3, 1, 4)
    q, k, v = qkv[0], qkv[1], qkv[2]                             # (B, H, N, hd)
    q = q * scale
    attn = jnp.einsum("bhnd,bhmd->bhnm", q.astype(jnp.float32), k.astype(jnp.float32))
    attn = jax.nn.softmax(attn, axis=-1).astype(x.dtype)
    out = jnp.einsum("bhnm,bhmd->bhnd", attn, v)
    out = out.transpose(0, 2, 1, 3).reshape(B, N, C)
    return out @ w_proj.T + b_proj


if __name__ == "__main__":
    B, N, C = 2, 8, 32          # batch=2, seq=8, hidden=32, heads=8 -> head_dim=4
    key = jax.random.PRNGKey(0)
    kx, kqkv, kproj, kbias = jax.random.split(key, 4)

    x = jax.random.normal(kx, (B, N, C), dtype=jnp.float32)
    # Deterministic synthetic parameters (nn.Linear shapes: (out, in)).
    w_qkv = 0.05 * jax.random.normal(kqkv, (3 * C, C), dtype=jnp.float32)
    w_proj = 0.05 * jax.random.normal(kproj, (C, C), dtype=jnp.float32)
    b_proj = 0.05 * jax.random.normal(kbias, (C,), dtype=jnp.float32)

    ref = reference(x, w_qkv, w_proj, b_proj)

    # Exact-semantics path (f32 MXU operands, matches the PyTorch f32 forward).
    out = jax.block_until_ready(self_attention(x, w_qkv, w_proj, b_proj))
    np.testing.assert_allclose(np.asarray(out), np.asarray(ref), atol=2e-3, rtol=2e-3)

    # Fast path: bf16 MXU operands, f32 accumulation and f32 softmax.
    out_bf16 = jax.block_until_ready(
        self_attention(x, w_qkv, w_proj, b_proj, matmul_dtype=jnp.bfloat16))
    np.testing.assert_allclose(np.asarray(out_bf16), np.asarray(ref), atol=2e-2, rtol=2e-2)

    print("KERNEL_OK")
</pallas_src>

<mosaic_0001>
module attributes {stable_mosaic.version = 11 : i64} {
  func.func @self_attention_kernel(%arg0: i32, %arg1: memref<2x8x32xf32, #tpu.memory_space<vmem>>, %arg2: memref<8x32x4xf32, #tpu.memory_space<vmem>>, %arg3: memref<8x32x4xf32, #tpu.memory_space<vmem>>, %arg4: memref<8x32x4xf32, #tpu.memory_space<vmem>>, %arg5: memref<8x4x32xf32, #tpu.memory_space<vmem>>, %arg6: memref<1x32xf32, #tpu.memory_space<vmem>>, %arg7: memref<2x8x32xf32, #tpu.memory_space<vmem>>) attributes {dimension_semantics = [#tpu.dimension_semantics<parallel>], iteration_bounds = array<i64: 1>, scalar_prefetch = 0 : i64, scratch_operands = 0 : i64, tpu.core_type = #tpu.core_type<tc>, window_params = [{transform_indices = @transform_0, window_bounds = array<i64: 2, 8, 32>}, {pipeline_mode = #tpu.pipeline_mode<synchronous>, transform_indices = @transform_1, window_bounds = array<i64: 8, 32, 4>}, {pipeline_mode = #tpu.pipeline_mode<synchronous>, transform_indices = @transform_2, window_bounds = array<i64: 8, 32, 4>}, {pipeline_mode = #tpu.pipeline_mode<synchronous>, transform_indices = @transform_3, window_bounds = array<i64: 8, 32, 4>}, {pipeline_mode = #tpu.pipeline_mode<synchronous>, transform_indices = @transform_4, window_bounds = array<i64: 8, 4, 32>}, {pipeline_mode = #tpu.pipeline_mode<synchronous>, transform_indices = @transform_5, window_bounds = array<i64: 1, 32>}, {transform_indices = @transform_6, window_bounds = array<i64: 2, 8, 32>}]} {
    %c0 = arith.constant 0 : index
    %c0_0 = arith.constant 0 : index
    %c0_1 = arith.constant 0 : index
    %0 = vector.load %arg1[%c0, %c0_0, %c0_1] : memref<2x8x32xf32, #tpu.memory_space<vmem>>, vector<2x8x32xf32>
    %1 = vector.shape_cast %0 : vector<2x8x32xf32> to vector<2x1x8x32xf32>
    %2 = vector.shape_cast %1 : vector<2x1x8x32xf32> to vector<2x1x8x32xf32>
    %3 = vector.broadcast %2 : vector<2x1x8x32xf32> to vector<2x8x8x32xf32>
    %4 = vector.shape_cast %3 : vector<2x8x8x32xf32> to vector<16x8x32xf32>
    %c0_2 = arith.constant 0 : index
    %c0_3 = arith.constant 0 : index
    %c0_4 = arith.constant 0 : index
    %5 = vector.load %arg2[%c0_2, %c0_3, %c0_4] : memref<8x32x4xf32, #tpu.memory_space<vmem>>, vector<8x32x4xf32>
    %6 = vector.shape_cast %5 : vector<8x32x4xf32> to vector<1x8x32x4xf32>
    %7 = vector.shape_cast %6 : vector<1x8x32x4xf32> to vector<1x8x32x4xf32>
    %8 = vector.broadcast %7 : vector<1x8x32x4xf32> to vector<2x8x32x4xf32>
    %9 = vector.shape_cast %8 : vector<2x8x32x4xf32> to vector<16x32x4xf32>
    %c0_5 = arith.constant 0 : index
    %c0_6 = arith.constant 0 : index
    %c0_7 = arith.constant 0 : index
    %10 = vector.load %arg3[%c0_5, %c0_6, %c0_7] : memref<8x32x4xf32, #tpu.memory_space<vmem>>, vector<8x32x4xf32>
    %11 = vector.shape_cast %10 : vector<8x32x4xf32> to vector<1x8x32x4xf32>
    %12 = vector.shape_cast %11 : vector<1x8x32x4xf32> to vector<1x8x32x4xf32>
    %13 = vector.broadcast %12 : vector<1x8x32x4xf32> to vector<2x8x32x4xf32>
    %14 = vector.shape_cast %13 : vector<2x8x32x4xf32> to vector<16x32x4xf32>
    %c0_8 = arith.constant 0 : index
    %c0_9 = arith.constant 0 : index
    %c0_10 = arith.constant 0 : index
    %15 = vector.load %arg4[%c0_8, %c0_9, %c0_10] : memref<8x32x4xf32, #tpu.memory_space<vmem>>, vector<8x32x4xf32>
    %16 = vector.shape_cast %15 : vector<8x32x4xf32> to vector<1x8x32x4xf32>
    %17 = vector.shape_cast %16 : vector<1x8x32x4xf32> to vector<1x8x32x4xf32>
    %18 = vector.broadcast %17 : vector<1x8x32x4xf32> to vector<2x8x32x4xf32>
    %19 = vector.shape_cast %18 : vector<2x8x32x4xf32> to vector<16x32x4xf32>
    %c0_11 = arith.constant 0 : index
    %c0_12 = arith.constant 0 : index
    %c0_13 = arith.constant 0 : index
    %20 = vector.load %arg5[%c0_11, %c0_12, %c0_13] : memref<8x4x32xf32, #tpu.memory_space<vmem>>, vector<8x4x32xf32>
    %21 = vector.shape_cast %20 : vector<8x4x32xf32> to vector<1x8x4x32xf32>
    %22 = vector.shape_cast %21 : vector<1x8x4x32xf32> to vector<1x8x4x32xf32>
    %23 = vector.broadcast %22 : vector<1x8x4x32xf32> to vector<2x8x4x32xf32>
    %24 = vector.shape_cast %23 : vector<2x8x4x32xf32> to vector<16x4x32xf32>
    "tpu.trace_start"() <{level = 10 : i32, message = "bnc,bcd->bnd"}> : () -> ()
    %cst = arith.constant dense<0.000000e+00> : vector<16x8x4xf32>
    %25 = tpu.matmul %4, %9, %cst {dimension_numbers = #tpu.dot_dimension_numbers<[2], [1], [1], [2], [0, 0, 0, 1, 1, 2], [0], [0]>} : vector<16x8x32xf32>, vector<16x32x4xf32>, vector<16x8x4xf32> -> vector<16x8x4xf32>
    %cst_14 = arith.constant dense<0.000000e+00> : vector<16x8x4xf32>
    %26 = tpu.matmul %4, %14, %cst_14 {dimension_numbers = #tpu.dot_dimension_numbers<[2], [1], [1], [2], [0, 0, 0, 1, 1, 2], [0], [0]>} : vector<16x8x32xf32>, vector<16x32x4xf32>, vector<16x8x4xf32> -> vector<16x8x4xf32>
    %cst_15 = arith.constant dense<0.000000e+00> : vector<16x8x4xf32>
    %27 = tpu.matmul %4, %19, %cst_15 {dimension_numbers = #tpu.dot_dimension_numbers<[2], [1], [1], [2], [0, 0, 0, 1, 1, 2], [0], [0]>} : vector<16x8x32xf32>, vector<16x32x4xf32>, vector<16x8x4xf32> -> vector<16x8x4xf32>
    "tpu.trace_stop"() : () -> ()
    "tpu.trace_start"() <{level = 10 : i32, message = "bnd,bmd->bnm"}> : () -> ()
    %cst_16 = arith.constant dense<0.000000e+00> : vector<16x8x8xf32>
    %28 = tpu.matmul %25, %26, %cst_16 {dimension_numbers = #tpu.dot_dimension_numbers<[2], [2], [1], [1], [0, 0, 0, 1, 1, 1], [0], [0]>} : vector<16x8x4xf32>, vector<16x8x4xf32>, vector<16x8x8xf32> -> vector<16x8x8xf32>
    "tpu.trace_stop"() : () -> ()
    %cst_17 = arith.constant dense<0xFF800000> : vector<16x8xf32>
    %29 = vector.multi_reduction <maximumf>, %28, %cst_17 [2] : vector<16x8x8xf32> to vector<16x8xf32>
    %30 = vector.shape_cast %29 : vector<16x8xf32> to vector<16x8x1xf32>
    %31 = vector.broadcast %30 : vector<16x8x1xf32> to vector<16x8x8xf32>
    %32 = arith.subf %28, %31 : vector<16x8x8xf32>
    %33 = math.exp %32 : vector<16x8x8xf32>
    %cst_18 = arith.constant dense<0.000000e+00> : vector<16x8xf32>
    %34 = vector.multi_reduction <add>, %33, %cst_18 [2] : vector<16x8x8xf32> to vector<16x8xf32>
    %35 = vector.shape_cast %34 : vector<16x8xf32> to vector<16x8x1xf32>
    %36 = tpu.reciprocal %35 {approx = true} : vector<16x8x1xf32> -> vector<16x8x1xf32>
    %37 = vector.broadcast %36 : vector<16x8x1xf32> to vector<16x8x8xf32>
    %38 = arith.mulf %33, %37 : vector<16x8x8xf32>
    "tpu.trace_start"() <{level = 10 : i32, message = "bnm,bmd->bnd"}> : () -> ()
    %cst_19 = arith.constant dense<0.000000e+00> : vector<16x8x4xf32>
    %39 = tpu.matmul %38, %27, %cst_19 {dimension_numbers = #tpu.dot_dimension_numbers<[2], [1], [1], [2], [0, 0, 0, 1, 1, 2], [0], [0]>} : vector<16x8x8xf32>, vector<16x8x4xf32>, vector<16x8x4xf32> -> vector<16x8x4xf32>
    "tpu.trace_stop"() : () -> ()
    "tpu.trace_start"() <{level = 10 : i32, message = "bnd,bdc->bnc"}> : () -> ()
    %cst_20 = arith.constant dense<0.000000e+00> : vector<16x8x32xf32>
    %40 = tpu.matmul %39, %24, %cst_20 {dimension_numbers = #tpu.dot_dimension_numbers<[2], [1], [1], [2], [0, 0, 0, 1, 1, 2], [0], [0]>} : vector<16x8x4xf32>, vector<16x4x32xf32>, vector<16x8x32xf32> -> vector<16x8x32xf32>
    "tpu.trace_stop"() : () -> ()
    %41 = vector.shape_cast %40 : vector<16x8x32xf32> to vector<2x8x8x32xf32>
    %cst_21 = arith.constant dense<0.000000e+00> : vector<2x8x32xf32>
    %42 = vector.multi_reduction <add>, %41, %cst_21 [1] : vector<2x8x8x32xf32> to vector<2x8x32xf32>
    %c0_22 = arith.constant 0 : index
    %c0_23 = arith.constant 0 : index
    %43 = vector.load %arg6[%c0_22, %c0_23] : memref<1x32xf32, #tpu.memory_space<vmem>>, vector<1x32xf32>
    %44 = vector.shape_cast %43 : vector<1x32xf32> to vector<1x1x32xf32>
    %45 = vector.broadcast %44 : vector<1x1x32xf32> to vector<2x8x32xf32>
    %46 = arith.addf %42, %45 : vector<2x8x32xf32>
    %c0_24 = arith.constant 0 : index
    %c0_25 = arith.constant 0 : index
    %c0_26 = arith.constant 0 : index
    %47 = vector.load %arg7[%c0_24, %c0_25, %c0_26] : memref<2x8x32xf32, #tpu.memory_space<vmem>>, vector<2x8x32xf32>
    tpu.vector_store %arg7[%c0_24, %c0_25, %c0_26], %46 {strides = array<i32>} : memref<2x8x32xf32, #tpu.memory_space<vmem>>, vector<2x8x32xf32>,
    return
  }
  func.func @transform_0(%arg0: i32) -> (i32, i32, i32) {
    %c0_i32 = arith.constant 0 : i32
    %c0_i32_0 = arith.constant 0 : i32
    %c0_i32_1 = arith.constant 0 : i32
    return %arg0, %c0_i32, %c0_i32_0 : i32, i32, i32
  }
  func.func @transform_1(%arg0: i32) -> (i32, i32, i32) {
    %c0_i32 = arith.constant 0 : i32
    %c0_i32_0 = arith.constant 0 : i32
    %c0_i32_1 = arith.constant 0 : i32
    %c0_i32_2 = arith.constant 0 : i32
    return %c0_i32, %c0_i32_0, %c0_i32_1 : i32, i32, i32
  }
  func.func @transform_2(%arg0: i32) -> (i32, i32, i32) {
    %c0_i32 = arith.constant 0 : i32
    %c0_i32_0 = arith.constant 0 : i32
    %c0_i32_1 = arith.constant 0 : i32
    %c0_i32_2 = arith.constant 0 : i32
    return %c0_i32, %c0_i32_0, %c0_i32_1 : i32, i32, i32
  }
  func.func @transform_3(%arg0: i32) -> (i32, i32, i32) {
    %c0_i32 = arith.constant 0 : i32
    %c0_i32_0 = arith.constant 0 : i32
    %c0_i32_1 = arith.constant 0 : i32
    %c0_i32_2 = arith.constant 0 : i32
    return %c0_i32, %c0_i32_0, %c0_i32_1 : i32, i32, i32
  }
  func.func @transform_4(%arg0: i32) -> (i32, i32, i32) {
    %c0_i32 = arith.constant 0 : i32
    %c0_i32_0 = arith.constant 0 : i32
    %c0_i32_1 = arith.constant 0 : i32
    %c0_i32_2 = arith.constant 0 : i32
    return %c0_i32, %c0_i32_0, %c0_i32_1 : i32, i32, i32
  }
  func.func @transform_5(%arg0: i32) -> (i32, i32) {
    %c0_i32 = arith.constant 0 : i32
    %c0_i32_0 = arith.constant 0 : i32
    %c0_i32_1 = arith.constant 0 : i32
    return %c0_i32, %c0_i32_0 : i32, i32
  }
  func.func @transform_6(%arg0: i32) -> (i32, i32, i32) {
    %c0_i32 = arith.constant 0 : i32
    %c0_i32_0 = arith.constant 0 : i32
    %c0_i32_1 = arith.constant 0 : i32
    return %arg0, %c0_i32, %c0_i32_0 : i32, i32, i32
  }
}

</mosaic_0001>

<bundles_post_ra>
// kernel: tpu_custom_call.1
= control target key start
LH: loop header
LB: loop body
LE: loop exit
PB: predicated region body
PF: predicated region fallthrough
CT: control target
= control target key end

     0   :  { %v8924_v3 = vmov 0.0|0.0   ;;  %vm8925_vm0 = vmmov 0   ;;  %v8926_v11 = vmov 0.0   ;;  %vm130_vm1 = vcmask 261120   ;;  %s10212_s0 = inlined_call_operand.vmem [shape: f32[2,8,32], index: 0, kind: input, shape index: {}]   ;;  %s10213_s1 = inlined_call_operand.vmem [shape: f32[8,32,4], index: 1, kind: input, shape index: {}]   ;;  %s10214_s2 = inlined_call_operand.vmem [shape: f32[8,32,4], index: 2, kind: input, shape index: {}]   ;;  %s10215_s3 = inlined_call_operand.vmem [shape: f32[8,32,4], index: 3, kind: input, shape index: {}]   ;;  %s10216_s4 = inlined_call_operand.vmem [shape: f32[8,4,32], index: 4, kind: input, shape index: {}]   ;;  %s10217_s5 = inlined_call_operand.vmem [shape: f32[1,32], index: 5, kind: input, shape index: {}]   ;;  %s10218_s6 = inlined_call_operand.hbm [shape: f32[2,8,32], index: 6, kind: output, shape index: {}]  }
   0x1   :  { %v26_v0 = vld [vmem:[%s10213_s1] sm:$0xff]  ;;  %v27_v1 = vld [vmem:[%s10213_s1 + $0x8] sm:$0xff]  ;;  %8542 = vmatprep.subr.bf16.mxu0 %v8924_v3  ;;  %8548 = vmatprep.subr.bf16.mxu1 %v8924_v3  ;;  %v28_v6 = vld [vmem:[%s10213_s1 + $0x10] sm:$0xff] }
   0x2   :  { %v30_v2 = vld [vmem:[%s10213_s1 + $0x20] sm:$0xff]  ;;  %v8976_v4 = vpack.c.bf16 %v27_v1, %v26_v0  ;;  %v31_v5 = vld [vmem:[%s10213_s1 + $0x28] sm:$0xff]  ;;  %v29_v7 = vld [vmem:[%s10213_s1 + $0x18] sm:$0xff]  ;;  %7782 = vmatprep.mubr.msk.f32.mxu0 %vm8925_vm0, %v8926_v11  ;;  %7793 = vmatprep.mubr.msk.f32.mxu1 %vm8925_vm0, %v8926_v11 }
   0x3   :  { %v8987_v8 = vpack.c.bf16 %v31_v5, %v30_v2  ;;  %v32_v9 = vld [vmem:[%s10213_s1 + $0x30] sm:$0xff]  ;;  %v33_v10 = vld [vmem:[%s10213_s1 + $0x38] sm:$0xff]  ;;  %v9000_v12 = vpack.c.bf16 %v29_v7, %v28_v6  ;;  %v34_v14 = vld [vmem:[%s10213_s1 + $0x40] sm:$0xff] }
   0x4   :  { %8544 = vmatpush3.bf16.msra.mxu0 %v8976_v4  ;;  %v9004_v13 = vpack.c.bf16 %v33_v10, %v32_v9  ;;  %v35_v15 = vld [vmem:[%s10213_s1 + $0x48] sm:$0xff]  ;;  %v38_v16 = vld [vmem:[%s10213_s1 + $0x60] sm:$0xff]  ;;  %v36_v21 = vld [vmem:[%s10213_s1 + $0x50] sm:$0xff] }
   0x5   :  { %8550 = vmatpush3.bf16.msra.mxu1 %v8987_v8  ;;  %8545 = vmatprep.subr.bf16.mxu0 %v8924_v3  ;;  %v39_v17 = vld [vmem:[%s10213_s1 + $0x68] sm:$0xff]  ;;  %v9023_v18 = vld [vmem:[%s10212_s0] sm:$0xff]  ;;  %v9025_v19 = vpack.c.bf16 %v35_v15, %v34_v14  ;;  %v37_v22 = vld [vmem:[%s10213_s1 + $0x58] sm:$0xff] }
   0x6   :  { %8551 = vmatprep.subr.bf16.mxu1 %v8924_v3  ;;  %v9029_v20 = vpack.c.bf16 %v39_v17, %v38_v16  ;;  %v40_v23 = vld [vmem:[%s10213_s1 + $0x70] sm:$0xff]  ;;  %v41_v24 = vld [vmem:[%s10213_s1 + $0x78] sm:$0xff]  ;;  %v9049_v25 = vpack.c.bf16 %v37_v22, %v36_v21  ;;  %v42_v27 = vld [vmem:[%s10213_s1 + $0x80] sm:$0xff] }
   0x7   :  { %v9053_v26 = vpack.c.bf16 %v41_v24, %v40_v23  ;;  %v43_v28 = vld [vmem:[%s10213_s1 + $0x88] sm:$0xff]  ;;  %v46_v29 = vld [vmem:[%s10213_s1 + $0xa0] sm:$0xff]  ;;  %v44_v33 = vld [vmem:[%s10213_s1 + $0x90] sm:$0xff] }
   0x8   :  { %8547 = vmatpush3.bf16.msra.mxu0 %v9000_v12  ;;  %v47_v30 = vld [vmem:[%s10213_s1 + $0xa8] sm:$0xff]  ;;  %v9073_v31 = vpack.c.bf16 %v43_v28, %v42_v27  ;;  %v45_v34 = vld [vmem:[%s10213_s1 + $0x98] sm:$0xff]  ;;  %v48_v35 = vld [vmem:[%s10213_s1 + $0xb0] sm:$0xff] }
   0x9   :  { %8553 = vmatpush3.bf16.msra.mxu1 %v9004_v13  ;;  %8554 = vmatprep.subr.bf16.mxu0 %v8924_v3  ;;  %v9077_v32 = vpack.c.bf16 %v47_v30, %v46_v29  ;;  %v49_v36 = vld [vmem:[%s10213_s1 + $0xb8] sm:$0xff]  ;;  %v9097_v37 = vpack.c.bf16 %v45_v34, %v44_v33  ;;  %v50_v39 = vld [vmem:[%s10213_s1 + $0xc0] sm:$0xff]  ;;  %v51_v40 = vld [vmem:[%s10213_s1 + $0xc8] sm:$0xff] }
   0xa   :  { %8560 = vmatprep.subr.bf16.mxu1 %v8924_v3  ;;  %v9101_v38 = vpack.c.bf16 %v49_v36, %v48_v35  ;;  %v54_v41 = vld [vmem:[%s10213_s1 + $0xe0] sm:$0xff]  ;;  %v55_v42 = vld [vmem:[%s10213_s1 + $0xe8] sm:$0xff]  ;;  %v9121_v43 = vpack.c.bf16 %v51_v40, %v50_v39 }
   0xb   :  { %7783 = vmatmul.mubr.msk.f32.vlgmr.msra.gmra.mrb[0].mxu0 %vm130_vm1, %v9023_v18 }
   0xc   :  { %7794 = vmatmul.mubr.msk.f32.vlgmr.msra.gmra.mrb[0].mxu1 %vm130_vm1, %v9023_v18  ;;  %8556 = vmatpush3.bf16.msra.mxu0 %v9025_v19 }
   0xd   :  { %8562 = vmatpush3.bf16.msra.mxu1 %v9029_v20  ;;  %8557 = vmatprep.subr.bf16.mxu0 %v8924_v3 }
   0xe   :  { %8563 = vmatprep.subr.bf16.mxu1 %v8924_v3  ;;  %7804 = vmatprep.mubr.msk.f32.mxu0 %vm8925_vm0, %v8926_v11 }
   0xf   :  { %7815 = vmatprep.mubr.msk.f32.mxu1 %vm8925_vm0, %v8926_v11 }
  0x10   :  { %8559 = vmatpush3.bf16.msra.mxu0 %v9049_v25 }
  0x11   :  { %8565 = vmatpush3.bf16.msra.mxu1 %v9053_v26  ;;  %8566 = vmatprep.subr.bf16.mxu0 %v8924_v3 }
  0x12   :  { %8572 = vmatprep.subr.bf16.mxu1 %v8924_v3 }
  0x13   :  { %7805 = vmatmul.mubr.msk.f32.vlgmr.msra.gmra.mrb[2].mxu0 %vm130_vm1, %v9023_v18 }
  0x14   :  { %7816 = vmatmul.mubr.msk.f32.vlgmr.msra.gmra.mrb[2].mxu1 %vm130_vm1, %v9023_v18  ;;  %8568 = vmatpush3.bf16.msra.mxu0 %v9073_v31 }
  0x15   :  { %8574 = vmatpush3.bf16.msra.mxu1 %v9077_v32  ;;  %8569 = vmatprep.subr.bf16.mxu0 %v8924_v3 }
  0x16   :  { %8575 = vmatprep.subr.bf16.mxu1 %v8924_v3  ;;  %7826 = vmatprep.mubr.msk.f32.mxu0 %vm8925_vm0, %v8926_v11 }
  0x17   :  { %7837 = vmatprep.mubr.msk.f32.mxu1 %vm8925_vm0, %v8926_v11 }
  0x18   :  { %8571 = vmatpush3.bf16.msra.mxu0 %v9097_v37 }
  0x19   :  { %11 = vsyncpa [#allocation3], 0  ;;  %8577 = vmatpush3.bf16.msra.mxu1 %v9101_v38  ;;  %8578 = vmatprep.subr.bf16.mxu0 %v8924_v3  ;;  %v8585_v44 = vpack.c.bf16 %v55_v42, %v54_v41  ;;  %v52_v45 = vld [vmem:[%s10213_s1 + $0xd0] sm:$0xff]  ;;  %v53_v46 = vld [vmem:[%s10213_s1 + $0xd8] sm:$0xff]  ;;  %vm3497_vm2 = vcmask 31744   ;;  %vm4714_vm3 = vcmask 64512  }
  0x1a   :  { %8584 = vmatprep.subr.bf16.mxu1 %v8924_v3  ;;  %v56_v47 = vld [vmem:[%s10213_s1 + $0xf0] sm:$0xff]  ;;  %v57_v48 = vld [vmem:[%s10213_s1 + $0xf8] sm:$0xff]  ;;  %v8582_v49 = vpack.c.bf16 %v53_v46, %v52_v45  ;;  %v9167_v51 = vld [vmem:[%s10212_s0 + $0x8] sm:$0xff]  ;;  %vm6062_vm4 = vcmask 1043456  }
  0x1b   :  { %7827 = vmatmul.mubr.msk.f32.vlgmr.msra.gmra.mrb[4].mxu0 %vm130_vm1, %v9023_v18  ;;  %v8588_v50 = vpack.c.bf16 %v57_v48, %v56_v47  ;;  %v58_v52 = vld [vmem:[%s10214_s2] sm:$0xff]  ;;  %v59_v53 = vld [vmem:[%s10214_s2 + $0x8] sm:$0xff]  ;;  %v60_v58 = vld [vmem:[%s10214_s2 + $0x10] sm:$0xff] }
  0x1c   :  { %7838 = vmatmul.mubr.msk.f32.vlgmr.msra.gmra.mrb[4].mxu1 %vm130_vm1, %v9023_v18  ;;  %8580 = vmatpush3.bf16.msra.mxu0 %v9121_v43  ;;  %v62_v54 = vld [vmem:[%s10214_s2 + $0x20] sm:$0xff]  ;;  %v63_v55 = vld [vmem:[%s10214_s2 + $0x28] sm:$0xff]  ;;  %v9227_v56 = vpack.c.bf16 %v59_v53, %v58_v52  ;;  %v61_v59 = vld [vmem:[%s10214_s2 + $0x18] sm:$0xff] }
  0x1d   :  { %8586 = vmatpush3.bf16.msra.mxu1 %v8585_v44  ;;  %8581 = vmatprep.subr.bf16.mxu0 %v8924_v3  ;;  %v9230_v57 = vpack.c.bf16 %v63_v55, %v62_v54  ;;  %v64_v60 = vld [vmem:[%s10214_s2 + $0x30] sm:$0xff]  ;;  %v65_v61 = vld [vmem:[%s10214_s2 + $0x38] sm:$0xff]  ;;  %v9250_v62 = vpack.c.bf16 %v61_v59, %v60_v58  ;;  %v66_v0 = vld [vmem:[%s10214_s2 + $0x40] sm:$0xff] }
  0x1e   :  { %8587 = vmatprep.subr.bf16.mxu1 %v8924_v3  ;;  %7848 = vmatprep.mubr.msk.f32.mxu0 %vm8925_vm0, %v8926_v11  ;;  %v9254_v63 = vpack.c.bf16 %v65_v61, %v64_v60  ;;  %v67_v1 = vld [vmem:[%s10214_s2 + $0x48] sm:$0xff]  ;;  %v70_v2 = vld [vmem:[%s10214_s2 + $0x60] sm:$0xff]  ;;  %v68_v7 = vld [vmem:[%s10214_s2 + $0x50] sm:$0xff] }
  0x1f   :  { %7859 = vmatprep.mubr.msk.f32.mxu1 %vm8925_vm0, %v8926_v11  ;;  %v9274_v5 = vpack.c.bf16 %v67_v1, %v66_v0  ;;  %v72_v9 = vld [vmem:[%s10214_s2 + $0x70] sm:$0xff]  ;;  %v73_v10 = vld [vmem:[%s10214_s2 + $0x78] sm:$0xff]  ;;  %v74_v14 = vld [vmem:[%s10214_s2 + $0x80] sm:$0xff] }
  0x20   :  { %8583 = vmatpush3.bf16.msra.mxu0 %v8582_v49  ;;  %v75_v15 = vld [vmem:[%s10214_s2 + $0x88] sm:$0xff]  ;;  %v78_v16 = vld [vmem:[%s10214_s2 + $0xa0] sm:$0xff]  ;;  %v76_v21 = vld [vmem:[%s10214_s2 + $0x90] sm:$0xff] }
  0x21   :  { %8589 = vmatpush3.bf16.msra.mxu1 %v8588_v50  ;;  %8590 = vmatprep.subr.bf16.mxu0 %v8924_v3  ;;  %v79_v17 = vld [vmem:[%s10214_s2 + $0xa8] sm:$0xff]  ;;  %v77_v22 = vld [vmem:[%s10214_s2 + $0x98] sm:$0xff]  ;;  %v80_v23 = vld [vmem:[%s10214_s2 + $0xb0] sm:$0xff] }
  0x22   :  { %8596 = vmatprep.subr.bf16.mxu1 %v8924_v3  ;;  %v81_v24 = vld [vmem:[%s10214_s2 + $0xb8] sm:$0xff]  ;;  %v82_v27 = vld [vmem:[%s10214_s2 + $0xc0] sm:$0xff]  ;;  %v83_v28 = vld [vmem:[%s10214_s2 + $0xc8] sm:$0xff] }
  0x23   :  { %7849 = vmatmul.mubr.msk.f32.vlgmr.msra.gmra.mrb[6].mxu0 %vm130_vm1, %v9023_v18  ;;  %v86_v29 = vld [vmem:[%s10214_s2 + $0xe0] sm:$0xff]  ;;  %v87_v30 = vld [vmem:[%s10214_s2 + $0xe8] sm:$0xff]  ;;  %v84_v33 = vld [vmem:[%s10214_s2 + $0xd0] sm:$0xff] }
  0x24   :  { %7860 = vmatmul.mubr.msk.f32.vlgmr.msra.gmra.mrb[6].mxu1 %vm130_vm1, %v9023_v18  ;;  %8592 = vmatpush3.bf16.msra.mxu0 %v8976_v4  ;;  %v71_v4 = vld [vmem:[%s10214_s2 + $0x68] sm:$0xff]  ;;  %v85_v34 = vld [vmem:[%s10214_s2 + $0xd8] sm:$0xff]  ;;  %v88_v35 = vld [vmem:[%s10214_s2 + $0xf0] sm:$0xff] }
  0x25   :  { %8598 = vmatpush3.bf16.msra.mxu1 %v8987_v8  ;;  %8593 = vmatprep.subr.bf16.mxu0 %v8924_v3  ;;  %v9278_v6 = vpack.c.bf16 %v71_v4, %v70_v2  ;;  %v69_v8 = vld [vmem:[%s10214_s2 + $0x58] sm:$0xff]  ;;  %v90_v39 = vld [vmem:[%s10215_s3] sm:$0xff]  ;;  %v91_v40 = vld [vmem:[%s10215_s3 + $0x8] sm:$0xff] }
  0x26   :  { %8599 = vmatprep.subr.bf16.mxu1 %v8924_v3  ;;  %7870 = vmatprep.mubr.msk.f32.mxu0 %vm8925_vm0, %v8926_v11  ;;  %v89_v36 = vld [vmem:[%s10214_s2 + $0xf8] sm:$0xff]  ;;  %v94_v41 = vld [vmem:[%s10215_s3 + $0x20] sm:$0xff]  ;;  %v95_v42 = vld [vmem:[%s10215_s3 + $0x28] sm:$0xff] }
  0x27   :  { %7881 = vmatprep.mubr.msk.f32.mxu1 %vm8925_vm0, %v8926_v11  ;;  %v92_v45 = vld [vmem:[%s10215_s3 + $0x10] sm:$0xff]  ;;  %v93_v46 = vld [vmem:[%s10215_s3 + $0x18] sm:$0xff]  ;;  %v98_v52 = vld [vmem:[%s10215_s3 + $0x40] sm:$0xff] }
  0x28   :  { %8595 = vmatpush3.bf16.msra.mxu0 %v9000_v12  ;;  %v9298_v12 = vpack.c.bf16 %v69_v8, %v68_v7  ;;  %v96_v47 = vld [vmem:[%s10215_s3 + $0x30] sm:$0xff]  ;;  %v97_v48 = vld [vmem:[%s10215_s3 + $0x38] sm:$0xff]  ;;  %v99_v53 = vld [vmem:[%s10215_s3 + $0x48] sm:$0xff] }
  0x29   :  { %8601 = vmatpush3.bf16.msra.mxu1 %v9004_v13  ;;  %8602 = vmatprep.subr.bf16.mxu0 %v8924_v3  ;;  %v9302_v13 = vpack.c.bf16 %v73_v10, %v72_v9  ;;  %v102_v54 = vld [vmem:[%s10215_s3 + $0x60] sm:$0xff]  ;;  %v103_v55 = vld [vmem:[%s10215_s3 + $0x68] sm:$0xff]  ;;  %v100_v58 = vld [vmem:[%s10215_s3 + $0x50] sm:$0xff] }
  0x2a   :  { %8608 = vmatprep.subr.bf16.mxu1 %v8924_v3  ;;  %v101_v59 = vld [vmem:[%s10215_s3 + $0x58] sm:$0xff]  ;;  %v104_v60 = vld [vmem:[%s10215_s3 + $0x70] sm:$0xff]  ;;  %v106_v0 = vld [vmem:[%s10215_s3 + $0x80] sm:$0xff] }
  0x2b   :  { %7871 = vmatmul.mubr.msk.f32.vlgmr.msra.gmra.mrb[8].mxu0 %vm130_vm1, %v9167_v51  ;;  %v105_v61 = vld [vmem:[%s10215_s3 + $0x78] sm:$0xff]  ;;  %v107_v1 = vld [vmem:[%s10215_s3 + $0x88] sm:$0xff]  ;;  %v110_v2 = vld [vmem:[%s10215_s3 + $0xa0] sm:$0xff] }
  0x2c   :  { %7882 = vmatmul.mubr.msk.f32.vlgmr.msra.gmra.mrb[8].mxu1 %vm130_vm1, %v9167_v51  ;;  %8604 = vmatpush3.bf16.msra.mxu0 %v9025_v19  ;;  %v9322_v19 = vpack.c.bf16 %v75_v15, %v74_v14  ;;  %v111_v4 = vld [vmem:[%s10215_s3 + $0xa8] sm:$0xff]  ;;  %v108_v7 = vld [vmem:[%s10215_s3 + $0x90] sm:$0xff]  ;;  %v109_v8 = vld [vmem:[%s10215_s3 + $0x98] sm:$0xff] }
  0x2d   :  { %8610 = vmatpush3.bf16.msra.mxu1 %v9029_v20  ;;  %8605 = vmatprep.subr.bf16.mxu0 %v8924_v3  ;;  %v9326_v20 = vpack.c.bf16 %v79_v17, %v78_v16  ;;  %v112_v9 = vld [vmem:[%s10215_s3 + $0xb0] sm:$0xff]  ;;  %v113_v10 = vld [vmem:[%s10215_s3 + $0xb8] sm:$0xff]  ;;  %v114_v14 = vld [vmem:[%s10215_s3 + $0xc0] sm:$0xff] }
  0x2e   :  { %8611 = vmatprep.subr.bf16.mxu1 %v8924_v3  ;;  %7892 = vmatprep.mubr.msk.f32.mxu0 %vm8925_vm0, %v8926_v11  ;;  %v115_v15 = vld [vmem:[%s10215_s3 + $0xc8] sm:$0xff]  ;;  %v118_v16 = vld [vmem:[%s10215_s3 + $0xe0] sm:$0xff] }
  0x2f   :  { %7903 = vmatprep.mubr.msk.f32.mxu1 %vm8925_vm0, %v8926_v11  ;;  %v119_v17 = vld [vmem:[%s10215_s3 + $0xe8] sm:$0xff] }
  0x30   :  { %8607 = vmatpush3.bf16.msra.mxu0 %v9049_v25  ;;  %v9346_v25 = vpack.c.bf16 %v77_v22, %v76_v21  ;;  %v116_v21 = vld [vmem:[%s10215_s3 + $0xd0] sm:$0xff]  ;;  %v117_v22 = vld [vmem:[%s10215_s3 + $0xd8] sm:$0xff] }
  0x31   :  { %8613 = vmatpush3.bf16.msra.mxu1 %v9053_v26  ;;  %8614 = vmatprep.subr.bf16.mxu0 %v8924_v3  ;;  %v9350_v26 = vpack.c.bf16 %v81_v24, %v80_v23  ;;  %v120_v23 = vld [vmem:[%s10215_s3 + $0xf0] sm:$0xff]  ;;  %v121_v24 = vld [vmem:[%s10215_s3 + $0xf8] sm:$0xff] }
  0x32   :  { %8620 = vmatprep.subr.bf16.mxu1 %v8924_v3 }
  0x33   :  { %7893 = vmatmul.mubr.msk.f32.vlgmr.msra.gmra.mrb[10].mxu0 %vm130_vm1, %v9167_v51 }
  0x34   :  { %7904 = vmatmul.mubr.msk.f32.vlgmr.msra.gmra.mrb[10].mxu1 %vm130_vm1, %v9167_v51  ;;  %8616 = vmatpush3.bf16.msra.mxu0 %v9073_v31  ;;  %v8675_v31 = vpack.c.bf16 %v83_v28, %v82_v27 }
  0x35   :  { %8622 = vmatpush3.bf16.msra.mxu1 %v9077_v32  ;;  %8617 = vmatprep.subr.bf16.mxu0 %v8924_v3  ;;  %v8681_v32 = vpack.c.bf16 %v87_v30, %v86_v29 }
  0x36   :  { %8623 = vmatprep.subr.bf16.mxu1 %v8924_v3  ;;  %7914 = vmatprep.mubr.msk.f32.mxu0 %vm8925_vm0, %v8926_v11 }
  0x37   :  { %7925 = vmatprep.mubr.msk.f32.mxu1 %vm8925_vm0, %v8926_v11 }
  0x38   :  { %8619 = vmatpush3.bf16.msra.mxu0 %v9097_v37  ;;  %v8678_v37 = vpack.c.bf16 %v85_v34, %v84_v33 }
  0x39   :  { %8625 = vmatpush3.bf16.msra.mxu1 %v9101_v38  ;;  %8626 = vmatprep.subr.bf16.mxu0 %v8924_v3  ;;  %v8684_v38 = vpack.c.bf16 %v89_v36, %v88_v35 }
  0x3a   :  { %8632 = vmatprep.subr.bf16.mxu1 %v8924_v3 }
  0x3b   :  { %7915 = vmatmul.mubr.msk.f32.vlgmr.msra.gmra.mrb[12].mxu0 %vm130_vm1, %v9167_v51 }
  0x3c   :  { %7926 = vmatmul.mubr.msk.f32.vlgmr.msra.gmra.mrb[12].mxu1 %vm130_vm1, %v9167_v51  ;;  %8628 = vmatpush3.bf16.msra.mxu0 %v9121_v43  ;;  %v9467_v43 = vpack.c.bf16 %v91_v40, %v90_v39 }
  0x3d   :  { %8634 = vmatpush3.bf16.msra.mxu1 %v8585_v44  ;;  %8629 = vmatprep.subr.bf16.mxu0 %v8924_v3  ;;  %v9470_v44 = vpack.c.bf16 %v95_v42, %v94_v41 }
  0x3e   :  { %8635 = vmatprep.subr.bf16.mxu1 %v8924_v3  ;;  %7936 = vmatprep.mubr.msk.f32.mxu0 %vm8925_vm0, %v8926_v11 }
  0x3f   :  { %7947 = vmatprep.mubr.msk.f32.mxu1 %vm8925_vm0, %v8926_v11 }
  0x40   :  { %8631 = vmatpush3.bf16.msra.mxu0 %v8582_v49  ;;  %v9490_v49 = vpack.c.bf16 %v93_v46, %v92_v45 }
  0x41   :  { %8637 = vmatpush3.bf16.msra.mxu1 %v8588_v50  ;;  %8638 = vmatprep.subr.bf16.mxu0 %v8924_v3  ;;  %v9494_v50 = vpack.c.bf16 %v97_v48, %v96_v47 }
  0x42   :  { %8644 = vmatprep.subr.bf16.mxu1 %v8924_v3 }
  0x43   :  { %7937 = vmatmul.mubr.msk.f32.vlgmr.msra.gmra.mrb[14].mxu0 %vm130_vm1, %v9167_v51 }
  0x44   :  { %7948 = vmatmul.mubr.msk.f32.vlgmr.msra.gmra.mrb[14].mxu1 %vm130_vm1, %v9167_v51  ;;  %8640 = vmatpush3.bf16.msra.mxu0 %v9227_v56 }
  0x45   :  { %8646 = vmatpush3.bf16.msra.mxu1 %v9230_v57  ;;  %8641 = vmatprep.subr.bf16.mxu0 %v8924_v3 }
  0x46   :  { %8647 = vmatprep.subr.bf16.mxu1 %v8924_v3  ;;  %7958 = vmatprep.mubr.msk.f32.mxu0 %vm8925_vm0, %v8926_v11 }
  0x47   :  { %7969 = vmatprep.mubr.msk.f32.mxu1 %vm8925_vm0, %v8926_v11 }
  0x48   :  { %8643 = vmatpush3.bf16.msra.mxu0 %v9250_v62 }
  0x49   :  { %8649 = vmatpush3.bf16.msra.mxu1 %v9254_v63  ;;  %8650 = vmatprep.subr.bf16.mxu0 %v8924_v3 }
  0x4a   :  { %8656 = vmatprep.subr.bf16.mxu1 %v8924_v3 }
  0x4b   :  { %7959 = vmatmul.mubr.msk.f32.vlgmr.msra.gmra.mrb[16].mxu0 %vm130_vm1, %v9023_v18 }
  0x4c   :  { %7970 = vmatmul.mubr.msk.f32.vlgmr.msra.gmra.mrb[16].mxu1 %vm130_vm1, %v9023_v18  ;;  %8652 = vmatpush3.bf16.msra.mxu0 %v9274_v5 }
  0x4d   :  { %8658 = vmatpush3.bf16.msra.mxu1 %v9278_v6  ;;  %8653 = vmatprep.subr.bf16.mxu0 %v8924_v3 }
  0x4e   :  { %8659 = vmatprep.subr.bf16.mxu1 %v8924_v3  ;;  %7980 = vmatprep.mubr.msk.f32.mxu0 %vm8925_vm0, %v8926_v11 }
  0x4f   :  { %7991 = vmatprep.mubr.msk.f32.mxu1 %vm8925_vm0, %v8926_v11 }
  0x50   :  { %8655 = vmatpush3.bf16.msra.mxu0 %v9298_v12 }
  0x51   :  { %8661 = vmatpush3.bf16.msra.mxu1 %v9302_v13  ;;  %8662 = vmatprep.subr.bf16.mxu0 %v8924_v3 }
  0x52   :  { %8668 = vmatprep.subr.bf16.mxu1 %v8924_v3 }
  0x53   :  { %7981 = vmatmul.mubr.msk.f32.vlgmr.msra.gmra.mrb[18].mxu0 %vm130_vm1, %v9023_v18 }
  0x54   :  { %7992 = vmatmul.mubr.msk.f32.vlgmr.msra.gmra.mrb[18].mxu1 %vm130_vm1, %v9023_v18  ;;  %8664 = vmatpush3.bf16.msra.mxu0 %v9322_v19 }
  0x55   :  { %8670 = vmatpush3.bf16.msra.mxu1 %v9326_v20  ;;  %8665 = vmatprep.subr.bf16.mxu0 %v8924_v3 }
  0x56   :  { %8671 = vmatprep.subr.bf16.mxu1 %v8924_v3  ;;  %8002 = vmatprep.mubr.msk.f32.mxu0 %vm8925_vm0, %v8926_v11 }
  0x57   :  { %8013 = vmatprep.mubr.msk.f32.mxu1 %vm8925_vm0, %v8926_v11 }
  0x58   :  { %8667 = vmatpush3.bf16.msra.mxu0 %v9346_v25 }
  0x59   :  { %8673 = vmatpush3.bf16.msra.mxu1 %v9350_v26  ;;  %8674 = vmatprep.subr.bf16.mxu0 %v8924_v3 }
  0x5a   :  { %8680 = vmatprep.subr.bf16.mxu1 %v8924_v3 }
  0x5b   :  { %8003 = vmatmul.mubr.msk.f32.vlgmr.msra.gmra.mrb[20].mxu0 %vm130_vm1, %v9023_v18 }
  0x5c   :  { %8014 = vmatmul.mubr.msk.f32.vlgmr.msra.gmra.mrb[20].mxu1 %vm130_vm1, %v9023_v18  ;;  %8676 = vmatpush3.bf16.msra.mxu0 %v8675_v31 }
  0x5d   :  { %8682 = vmatpush3.bf16.msra.mxu1 %v8681_v32  ;;  %8677 = vmatprep.subr.bf16.mxu0 %v8924_v3 }
  0x5e   :  { %8683 = vmatprep.subr.bf16.mxu1 %v8924_v3  ;;  %8024 = vmatprep.mubr.msk.f32.mxu0 %vm8925_vm0, %v8926_v11 }
  0x5f   :  { %8035 = vmatprep.mubr.msk.f32.mxu1 %vm8925_vm0, %v8926_v11 }
  0x60   :  { %8679 = vmatpush3.bf16.msra.mxu0 %v8678_v37 }
  0x61   :  { %8685 = vmatpush3.bf16.msra.mxu1 %v8684_v38  ;;  %8686 = vmatprep.subr.bf16.mxu0 %v8924_v3 }
  0x62   :  { %8692 = vmatprep.subr.bf16.mxu1 %v8924_v3 }
  0x63   :  { %8025 = vmatmul.mubr.msk.f32.vlgmr.msra.gmra.mrb[22].mxu0 %vm130_vm1, %v9023_v18 }
  0x64   :  { %8036 = vmatmul.mubr.msk.f32.vlgmr.msra.gmra.mrb[22].mxu1 %vm130_vm1, %v9023_v18  ;;  %8688 = vmatpush3.bf16.msra.mxu0 %v9227_v56  ;;  %v9514_v56 = vpack.c.bf16 %v99_v53, %v98_v52 }
  0x65   :  { %8694 = vmatpush3.bf16.msra.mxu1 %v9230_v57  ;;  %8689 = vmatprep.subr.bf16.mxu0 %v8924_v3  ;;  %v9518_v57 = vpack.c.bf16 %v103_v55, %v102_v54 }
  0x66   :  { %8695 = vmatprep.subr.bf16.mxu1 %v8924_v3  ;;  %8046 = vmatprep.mubr.msk.f32.mxu0 %vm8925_vm0, %v8926_v11 }
  0x67   :  { %8057 = vmatprep.mubr.msk.f32.mxu1 %vm8925_vm0, %v8926_v11 }
  0x68   :  { %8691 = vmatpush3.bf16.msra.mxu0 %v9250_v62  ;;  %v9538_v62 = vpack.c.bf16 %v101_v59, %v100_v58 }
  0x69   :  { %8697 = vmatpush3.bf16.msra.mxu1 %v9254_v63  ;;  %8698 = vmatprep.subr.bf16.mxu0 %v8924_v3  ;;  %v9542_v63 = vpack.c.bf16 %v105_v61, %v104_v60 }
  0x6a   :  { %8704 = vmatprep.subr.bf16.mxu1 %v8924_v3 }
  0x6b   :  { %8047 = vmatmul.mubr.msk.f32.vlgmr.msra.gmra.mrb[24].mxu0 %vm130_vm1, %v9167_v51 }
  0x6c   :  { %8058 = vmatmul.mubr.msk.f32.vlgmr.msra.gmra.mrb[24].mxu1 %vm130_vm1, %v9167_v51  ;;  %8700 = vmatpush3.bf16.msra.mxu0 %v9274_v5  ;;  %v9562_v5 = vpack.c.bf16 %v107_v1, %v106_v0 }
  0x6d   :  { %8706 = vmatpush3.bf16.msra.mxu1 %v9278_v6  ;;  %8701 = vmatprep.subr.bf16.mxu0 %v8924_v3  ;;  %v9566_v6 = vpack.c.bf16 %v111_v4, %v110_v2 }
  0x6e   :  { %8707 = vmatprep.subr.bf16.mxu1 %v8924_v3  ;;  %8068 = vmatprep.mubr.msk.f32.mxu0 %vm8925_vm0, %v8926_v11 }
  0x6f   :  { %8079 = vmatprep.mubr.msk.f32.mxu1 %vm8925_vm0, %v8926_v11 }
  0x70   :  { %8703 = vmatpush3.bf16.msra.mxu0 %v9298_v12  ;;  %v9586_v12 = vpack.c.bf16 %v109_v8, %v108_v7 }
  0x71   :  { %8709 = vmatpush3.bf16.msra.mxu1 %v9302_v13  ;;  %8710 = vmatprep.subr.bf16.mxu0 %v8924_v3  ;;  %v9590_v13 = vpack.c.bf16 %v113_v10, %v112_v9 }
  0x72   :  { %8716 = vmatprep.subr.bf16.mxu1 %v8924_v3 }
  0x73   :  { %8069 = vmatmul.mubr.msk.f32.vlgmr.msra.gmra.mrb[26].mxu0 %vm130_vm1, %v9167_v51 }
  0x74   :  { %8080 = vmatmul.mubr.msk.f32.vlgmr.msra.gmra.mrb[26].mxu1 %vm130_vm1, %v9167_v51  ;;  %8712 = vmatpush3.bf16.msra.mxu0 %v9322_v19  ;;  %v8771_v19 = vpack.c.bf16 %v115_v15, %v114_v14 }
  0x75   :  { %8718 = vmatpush3.bf16.msra.mxu1 %v9326_v20  ;;  %8713 = vmatprep.subr.bf16.mxu0 %v8924_v3  ;;  %v8777_v20 = vpack.c.bf16 %v119_v17, %v118_v16 }
  0x76   :  { %8719 = vmatprep.subr.bf16.mxu1 %v8924_v3  ;;  %8090 = vmatprep.mubr.msk.f32.mxu0 %vm8925_vm0, %v8926_v11 }
  0x77   :  { %8101 = vmatprep.mubr.msk.f32.mxu1 %vm8925_vm0, %v8926_v11 }
  0x78   :  { %8715 = vmatpush3.bf16.msra.mxu0 %v9346_v25  ;;  %v8774_v25 = vpack.c.bf16 %v117_v22, %v116_v21 }
  0x79   :  { %8721 = vmatpush3.bf16.msra.mxu1 %v9350_v26  ;;  %8722 = vmatprep.subr.bf16.mxu0 %v8924_v3  ;;  %v8780_v26 = vpack.c.bf16 %v121_v24, %v120_v23 }
  0x7a   :  { %8728 = vmatprep.subr.bf16.mxu1 %v8924_v3 }
  0x7b   :  { %8091 = vmatmul.mubr.msk.f32.vlgmr.msra.gmra.mrb[28].mxu0 %vm130_vm1, %v9167_v51 }
  0x7c   :  { %8102 = vmatmul.mubr.msk.f32.vlgmr.msra.gmra.mrb[28].mxu1 %vm130_vm1, %v9167_v51  ;;  %8724 = vmatpush3.bf16.msra.mxu0 %v8675_v31 }
  0x7d   :  { %8730 = vmatpush3.bf16.msra.mxu1 %v8681_v32  ;;  %8725 = vmatprep.subr.bf16.mxu0 %v8924_v3 }
  0x7e   :  { %8731 = vmatprep.subr.bf16.mxu1 %v8924_v3  ;;  %8112 = vmatprep.mubr.msk.f32.mxu0 %vm8925_vm0, %v8926_v11 }
  0x7f   :  { %8123 = vmatprep.mubr.msk.f32.mxu1 %vm8925_vm0, %v8926_v11 }
  0x80   :  { %8727 = vmatpush3.bf16.msra.mxu0 %v8678_v37 }
  0x81   :  { %8733 = vmatpush3.bf16.msra.mxu1 %v8684_v38  ;;  %8734 = vmatprep.subr.bf16.mxu0 %v8924_v3 }
  0x82   :  { %8740 = vmatprep.subr.bf16.mxu1 %v8924_v3 }
  0x83   :  { %8113 = vmatmul.mubr.msk.f32.vlgmr.msra.gmra.mrb[30].mxu0 %vm130_vm1, %v9167_v51 }
  0x84   :  { %8124 = vmatmul.mubr.msk.f32.vlgmr.msra.gmra.mrb[30].mxu1 %vm130_vm1, %v9167_v51  ;;  %8736 = vmatpush3.bf16.msra.mxu0 %v9467_v43 }
  0x85   :  { %8742 = vmatpush3.bf16.msra.mxu1 %v9470_v44  ;;  %8737 = vmatprep.subr.bf16.mxu0 %v8924_v3 }
  0x86   :  { %8743 = vmatprep.subr.bf16.mxu1 %v8924_v3  ;;  %8134 = vmatprep.mubr.msk.f32.mxu0 %vm8925_vm0, %v8926_v11 }
  0x87   :  { %8145 = vmatprep.mubr.msk.f32.mxu1 %vm8925_vm0, %v8926_v11 }
  0x88   :  { %8739 = vmatpush3.bf16.msra.mxu0 %v9490_v49 }
  0x89   :  { %8745 = vmatpush3.bf16.msra.mxu1 %v9494_v50  ;;  %8746 = vmatprep.subr.bf16.mxu0 %v8924_v3 }
  0x8a   :  { %8752 = vmatprep.subr.bf16.mxu1 %v8924_v3 }
  0x8b   :  { %8135 = vmatmul.mubr.msk.f32.vlgmr.msra.gmra.mrb[32].mxu0 %vm130_vm1, %v9023_v18 }
  0x8c   :  { %8146 = vmatmul.mubr.msk.f32.vlgmr.msra.gmra.mrb[32].mxu1 %vm130_vm1, %v9023_v18  ;;  %8748 = vmatpush3.bf16.msra.mxu0 %v9514_v56 }
  0x8d   :  { %8754 = vmatpush3.bf16.msra.mxu1 %v9518_v57  ;;  %8749 = vmatprep.subr.bf16.mxu0 %v8924_v3 }
  0x8e   :  { %8755 = vmatprep.subr.bf16.mxu1 %v8924_v3  ;;  %8156 = vmatprep.mubr.msk.f32.mxu0 %vm8925_vm0, %v8926_v11 }
  0x8f   :  { %8167 = vmatprep.mubr.msk.f32.mxu1 %vm8925_vm0, %v8926_v11 }
  0x90   :  { %8751 = vmatpush3.bf16.msra.mxu0 %v9538_v62 }
  0x91   :  { %8757 = vmatpush3.bf16.msra.mxu1 %v9542_v63  ;;  %8758 = vmatprep.subr.bf16.mxu0 %v8924_v3 }
  0x92   :  { %8764 = vmatprep.subr.bf16.mxu1 %v8924_v3 }
  0x93   :  { %8157 = vmatmul.mubr.msk.f32.vlgmr.msra.gmra.mrb[34].mxu0 %vm130_vm1, %v9023_v18 }
  0x94   :  { %8168 = vmatmul.mubr.msk.f32.vlgmr.msra.gmra.mrb[34].mxu1 %vm130_vm1, %v9023_v18  ;;  %8760 = vmatpush3.bf16.msra.mxu0 %v9562_v5 }
  0x95   :  { %8766 = vmatpush3.bf16.msra.mxu1 %v9566_v6  ;;  %8761 = vmatprep.subr.bf16.mxu0 %v8924_v3 }
  0x96   :  { %8767 = vmatprep.subr.bf16.mxu1 %v8924_v3  ;;  %8178 = vmatprep.mubr.msk.f32.mxu0 %vm8925_vm0, %v8926_v11 }
  0x97   :  { %8189 = vmatprep.mubr.msk.f32.mxu1 %vm8925_vm0, %v8926_v11 }
  0x98   :  { %8763 = vmatpush3.bf16.msra.mxu0 %v9586_v12 }
  0x99   :  { %8769 = vmatpush3.bf16.msra.mxu1 %v9590_v13  ;;  %8770 = vmatprep.subr.bf16.mxu0 %v8924_v3 }
  0x9a   :  { %8776 = vmatprep.subr.bf16.mxu1 %v8924_v3 }
  0x9b   :  { %8179 = vmatmul.mubr.msk.f32.vlgmr.msra.gmra.mrb[36].mxu0 %vm130_vm1, %v9023_v18 }
  0x9c   :  { %8190 = vmatmul.mubr.msk.f32.vlgmr.msra.gmra.mrb[36].mxu1 %vm130_vm1, %v9023_v18  ;;  %8772 = vmatpush3.bf16.msra.mxu0 %v8771_v19 }
  0x9d   :  { %8778 = vmatpush3.bf16.msra.mxu1 %v8777_v20  ;;  %8773 = vmatprep.subr.bf16.mxu0 %v8924_v3 }
  0x9e   :  { %8779 = vmatprep.subr.bf16.mxu1 %v8924_v3  ;;  %8200 = vmatprep.mubr.msk.f32.mxu0 %vm8925_vm0, %v8926_v11 }
  0x9f   :  { %8211 = vmatprep.mubr.msk.f32.mxu1 %vm8925_vm0, %v8926_v11 }
  0xa0   :  { %8775 = vmatpush3.bf16.msra.mxu0 %v8774_v25 }
  0xa1   :  { %8781 = vmatpush3.bf16.msra.mxu1 %v8780_v26  ;;  %8782 = vmatprep.subr.bf16.mxu0 %v8924_v3 }
  0xa2   :  { %8788 = vmatprep.subr.bf16.mxu1 %v8924_v3 }
  0xa3   :  { %8201 = vmatmul.mubr.msk.f32.vlgmr.msra.gmra.mrb[38].mxu0 %vm130_vm1, %v9023_v18 }
  0xa4   :  { %8212 = vmatmul.mubr.msk.f32.vlgmr.msra.gmra.mrb[38].mxu1 %vm130_vm1, %v9023_v18  ;;  %8784 = vmatpush3.bf16.msra.mxu0 %v9467_v43 }
  0xa5   :  { %8790 = vmatpush3.bf16.msra.mxu1 %v9470_v44  ;;  %8785 = vmatprep.subr.bf16.mxu0 %v8924_v3 }
  0xa6   :  { %8791 = vmatprep.subr.bf16.mxu1 %v8924_v3  ;;  %8222 = vmatprep.mubr.msk.f32.mxu0 %vm8925_vm0, %v8926_v11 }
  0xa7   :  { %8233 = vmatprep.mubr.msk.f32.mxu1 %vm8925_vm0, %v8926_v11 }
  0xa8   :  { %8787 = vmatpush3.bf16.msra.mxu0 %v9490_v49 }
  0xa9   :  { %8793 = vmatpush3.bf16.msra.mxu1 %v9494_v50  ;;  %8794 = vmatprep.subr.bf16.mxu0 %v8924_v3 }
  0xaa   :  { %8800 = vmatprep.subr.bf16.mxu1 %v8924_v3 }
  0xab   :  { %8223 = vmatmul.mubr.msk.f32.vlgmr.msra.gmra.mrb[40].mxu0 %vm130_vm1, %v9167_v51 }
  0xac   :  { %8234 = vmatmul.mubr.msk.f32.vlgmr.msra.gmra.mrb[40].mxu1 %vm130_vm1, %v9167_v51  ;;  %8796 = vmatpush3.bf16.msra.mxu0 %v9514_v56 }
  0xad   :  { %8802 = vmatpush3.bf16.msra.mxu1 %v9518_v57  ;;  %8797 = vmatprep.subr.bf16.mxu0 %v8924_v3 }
  0xae   :  { %8803 = vmatprep.subr.bf16.mxu1 %v8924_v3  ;;  %8244 = vmatprep.mubr.msk.f32.mxu0 %vm8925_vm0, %v8926_v11 }
  0xaf   :  { %8255 = vmatprep.mubr.msk.f32.mxu1 %vm8925_vm0, %v8926_v11 }
  0xb0   :  { %8799 = vmatpush3.bf16.msra.mxu0 %v9538_v62 }
  0xb1   :  { %8805 = vmatpush3.bf16.msra.mxu1 %v9542_v63  ;;  %8806 = vmatprep.subr.bf16.mxu0 %v8924_v3 }
  0xb2   :  { %8812 = vmatprep.subr.bf16.mxu1 %v8924_v3 }
  0xb3   :  { %8245 = vmatmul.mubr.msk.f32.vlgmr.msra.gmra.mrb[42].mxu0 %vm130_vm1, %v9167_v51 }
  0xb4   :  { %8256 = vmatmul.mubr.msk.f32.vlgmr.msra.gmra.mrb[42].mxu1 %vm130_vm1, %v9167_v51  ;;  %8808 = vmatpush3.bf16.msra.mxu0 %v9562_v5 }
  0xb5   :  { %8814 = vmatpush3.bf16.msra.mxu1 %v9566_v6  ;;  %8809 = vmatprep.subr.bf16.mxu0 %v8924_v3 }
  0xb6   :  { %8815 = vmatprep.subr.bf16.mxu1 %v8924_v3  ;;  %8266 = vmatprep.mubr.msk.f32.mxu0 %vm8925_vm0, %v8926_v11 }
  0xb7   :  { %8277 = vmatprep.mubr.msk.f32.mxu1 %vm8925_vm0, %v8926_v11 }
  0xb8   :  { %8811 = vmatpush3.bf16.msra.mxu0 %v9586_v12 }
  0xb9   :  { %8817 = vmatpush3.bf16.msra.mxu1 %v9590_v13  ;;  %8818 = vmatprep.subr.bf16.mxu0 %v8924_v3 }
  0xba   :  { %8824 = vmatprep.subr.bf16.mxu1 %v8924_v3 }
  0xbb   :  { %8267 = vmatmul.mubr.msk.f32.vlgmr.msra.gmra.mrb[44].mxu0 %vm130_vm1, %v9167_v51 }
  0xbc   :  { %8278 = vmatmul.mubr.msk.f32.vlgmr.msra.gmra.mrb[44].mxu1 %vm130_vm1, %v9167_v51  ;;  %8820 = vmatpush3.bf16.msra.mxu0 %v8771_v19 }
  0xbd   :  { %8826 = vmatpush3.bf16.msra.mxu1 %v8777_v20  ;;  %8821 = vmatprep.subr.bf16.mxu0 %v8924_v3 }
  0xbe   :  { %8827 = vmatprep.subr.bf16.mxu1 %v8924_v3  ;;  %8288 = vmatprep.mubr.msk.f32.mxu0 %vm8925_vm0, %v8926_v11 }
  0xbf   :  { %8299 = vmatprep.mubr.msk.f32.mxu1 %vm8925_vm0, %v8926_v11 }
  0xc0   :  { %8823 = vmatpush3.bf16.msra.mxu0 %v8774_v25 }
  0xc1   :  { %8829 = vmatpush3.bf16.msra.mxu1 %v8780_v26  ;;  %8302 = vmatprep.subr.mxu0 %v8926_v11 }
  0xc2   :  { %8307 = vmatprep.subr.mxu1 %v8926_v11 }
  0xc3   :  { %8289 = vmatmul.mubr.msk.f32.vlgmr.msra.gmra.mrb[46].mxu0 %vm130_vm1, %v9167_v51 }
  0xc4   :  { %8300 = vmatmul.mubr.msk.f32.vlgmr.msra.gmra.mrb[46].mxu1 %vm130_vm1, %v9167_v51  ;;  %8304 = vmatprep.mubr.msk.f32.mxu0 %vm8925_vm0, %v8926_v11 }
  0xc5   :  { %8309 = vmatprep.mubr.msk.f32.mxu1 %vm8925_vm0, %v8926_v11 }
  0xde   :  { %v200_v3 = vpop.f32.mrb[0].mxu0 }
  0xdf   :  { %v7784_v18 = vpop.f32.mrb[1].mxu0  ;;  %v270_v27 = vpop.f32.mrb[0].mxu1 }
  0xe0   :  { %v7795_v28 = vpop.f32.mrb[1].mxu1 }
  0xe6   :  { %v340_v29 = vpop.f32.mrb[2].mxu0 }
  0xe7   :  { %v7806_v30 = vpop.f32.mrb[3].mxu0  ;;  %v410_v31 = vpop.f32.mrb[2].mxu1 }
  0xe8   :  { %v7817_v32 = vpop.f32.mrb[3].mxu1 }
  0xee   :  { %v480_v33 = vpop.f32.mrb[4].mxu0 }
  0xef   :  { %v7828_v34 = vpop.f32.mrb[5].mxu0  ;;  %v550_v35 = vpop.f32.mrb[4].mxu1 }
  0xf0   :  { %v7839_v36 = vpop.f32.mrb[5].mxu1 }
  0xf6   :  { %v9705_v37 = vpop.f32.mrb[6].mxu0 }
  0xf7   :  { %v7850_v51 = vpop.f32.mrb[7].mxu0  ;;  %v9707_v38 = vpop.f32.mrb[6].mxu1 }
  0xf8   :  { %v7861_v39 = vpop.f32.mrb[7].mxu1 }
  0xfe   :  { %v9709_v40 = vpop.f32.mrb[8].mxu0 }
  0xff   :  { %v7872_v41 = vpop.f32.mrb[9].mxu0  ;;  %v9711_v42 = vpop.f32.mrb[8].mxu1 }
 0x100   :  { %v7883_v43 = vpop.f32.mrb[9].mxu1 }
 0x106   :  { %v9713_v44 = vpop.f32.mrb[10].mxu0 }
 0x107   :  { %v7894_v45 = vpop.f32.mrb[11].mxu0  ;;  %v9715_v46 = vpop.f32.mrb[10].mxu1 }
 0x108   :  { %v7905_v47 = vpop.f32.mrb[11].mxu1 }
 0x10e   :  { %v9717_v48 = vpop.f32.mrb[12].mxu0 }
 0x10f   :  { %v7916_v49 = vpop.f32.mrb[13].mxu0  ;;  %v9719_v50 = vpop.f32.mrb[12].mxu1 }
 0x110   :  { %v7927_v52 = vpop.f32.mrb[13].mxu1 }
 0x116   :  { %v9721_v53 = vpop.f32.mrb[14].mxu0 }
 0x117   :  { %v7938_v54 = vpop.f32.mrb[15].mxu0  ;;  %v9723_v55 = vpop.f32.mrb[14].mxu1 }
 0x118   :  { %v7949_v56 = vpop.f32.mrb[15].mxu1 }
 0x11e   :  { %v1323_v57 = vpop.f32.mrb[16].mxu0 }
 0x11f   :  { %v1393_v58 = vpop.f32.mrb[16].mxu1  ;;  %v7960_v59 = vpop.f32.mrb[17].mxu0  ;;  %8303 = vmatpush3.xpose.msk.msra.mxu0 %vm3497_vm2, %v1323_v57 }
 0x120   :  { %8308 = vmatpush3.xpose.msk.msra.mxu1 %vm3497_vm2, %v1393_v58  ;;  %v7971_v60 = vpop.f32.mrb[17].mxu1  ;;  %8312 = vmatprep.subr.mxu0 %v8926_v11 }
 0x121   :  { %8317 = vmatprep.subr.mxu1 %v8926_v11 }
 0x122   :  { %8305 = vmatmul.mubr.msk.f32.vlgmr.msra.gmra.mrb[48].mxu0 %vm3497_vm2, %v200_v3 }
 0x123   :  { %8310 = vmatmul.mubr.msk.f32.vlgmr.msra.gmra.mrb[48].mxu1 %vm3497_vm2, %v270_v27  ;;  %8314 = vmatprep.mubr.msk.f32.mxu0 %vm8925_vm0, %v8926_v11 }
 0x124   :  { %8319 = vmatprep.mubr.msk.f32.mxu1 %vm8925_vm0, %v8926_v11 }
 0x126   :  { %v1463_v61 = vpop.f32.mrb[18].mxu0 }
 0x127   :  { %v1533_v62 = vpop.f32.mrb[18].mxu1  ;;  %v7982_v63 = vpop.f32.mrb[19].mxu0  ;;  %8313 = vmatpush3.xpose.msk.msra.mxu0 %vm3497_vm2, %v1463_v61 }
 0x128   :  { %8318 = vmatpush3.xpose.msk.msra.mxu1 %vm3497_vm2, %v1533_v62  ;;  %v7993_v0 = vpop.f32.mrb[19].mxu1  ;;  %8322 = vmatprep.subr.mxu0 %v8926_v11 }
 0x129   :  { %8327 = vmatprep.subr.mxu1 %v8926_v11 }
 0x12a   :  { %8315 = vmatmul.mubr.msk.f32.vlgmr.msra.gmra.mrb[50].mxu0 %vm3497_vm2, %v340_v29 }
 0x12b   :  { %8320 = vmatmul.mubr.msk.f32.vlgmr.msra.gmra.mrb[50].mxu1 %vm3497_vm2, %v410_v31  ;;  %8324 = vmatprep.mubr.msk.f32.mxu0 %vm8925_vm0, %v8926_v11 }
 0x12c   :  { %8329 = vmatprep.mubr.msk.f32.mxu1 %vm8925_vm0, %v8926_v11 }
 0x12e   :  { %v1603_v1 = vpop.f32.mrb[20].mxu0 }
 0x12f   :  { %v1673_v2 = vpop.f32.mrb[20].mxu1  ;;  %v8004_v4 = vpop.f32.mrb[21].mxu0  ;;  %8323 = vmatpush3.xpose.msk.msra.mxu0 %vm3497_vm2, %v1603_v1 }
 0x130   :  { %8328 = vmatpush3.xpose.msk.msra.mxu1 %vm3497_vm2, %v1673_v2  ;;  %v8015_v5 = vpop.f32.mrb[21].mxu1  ;;  %8332 = vmatprep.subr.mxu0 %v8926_v11 }
 0x131   :  { %8337 = vmatprep.subr.mxu1 %v8926_v11 }
 0x132   :  { %8325 = vmatmul.mubr.msk.f32.vlgmr.msra.gmra.mrb[52].mxu0 %vm3497_vm2, %v480_v33 }
 0x133   :  { %8330 = vmatmul.mubr.msk.f32.vlgmr.msra.gmra.mrb[52].mxu1 %vm3497_vm2, %v550_v35  ;;  %8334 = vmatprep.mubr.msk.f32.mxu0 %vm8925_vm0, %v8926_v11 }
 0x134   :  { %8339 = vmatprep.mubr.msk.f32.mxu1 %vm8925_vm0, %v8926_v11 }
 0x136   :  { %v1743_v6 = vpop.f32.mrb[22].mxu0 }
 0x137   :  { %v1813_v7 = vpop.f32.mrb[22].mxu1  ;;  %v8026_v8 = vpop.f32.mrb[23].mxu0  ;;  %8333 = vmatpush3.xpose.msk.msra.mxu0 %vm3497_vm2, %v1743_v6 }
 0x138   :  { %8338 = vmatpush3.xpose.msk.msra.mxu1 %vm3497_vm2, %v1813_v7  ;;  %v8037_v9 = vpop.f32.mrb[23].mxu1  ;;  %8342 = vmatprep.subr.mxu0 %v8926_v11 }
 0x139   :  { %8347 = vmatprep.subr.mxu1 %v8926_v11 }
 0x13a   :  { %8335 = vmatmul.mubr.msk.f32.vlgmr.msra.gmra.mrb[54].mxu0 %vm3497_vm2, %v9705_v37 }
 0x13b   :  { %8340 = vmatmul.mubr.msk.f32.vlgmr.msra.gmra.mrb[54].mxu1 %vm3497_vm2, %v9707_v38  ;;  %8344 = vmatprep.mubr.msk.f32.mxu0 %vm8925_vm0, %v8926_v11 }
 0x13c   :  { %8349 = vmatprep.mubr.msk.f32.mxu1 %vm8925_vm0, %v8926_v11 }
 0x13e   :  { %v1883_v10 = vpop.f32.mrb[24].mxu0 }
 0x13f   :  { %v1953_v12 = vpop.f32.mrb[24].mxu1  ;;  %v8048_v13 = vpop.f32.mrb[25].mxu0  ;;  %8343 = vmatpush3.xpose.msk.msra.mxu0 %vm3497_vm2, %v1883_v10 }
 0x140   :  { %8348 = vmatpush3.xpose.msk.msra.mxu1 %vm3497_vm2, %v1953_v12  ;;  %v8059_v14 = vpop.f32.mrb[25].mxu1  ;;  %8352 = vmatprep.subr.mxu0 %v8926_v11 }
 0x141   :  { %8357 = vmatprep.subr.mxu1 %v8926_v11 }
 0x142   :  { %8345 = vmatmul.mubr.msk.f32.vlgmr.msra.gmra.mrb[56].mxu0 %vm3497_vm2, %v9709_v40 }
 0x143   :  { %8350 = vmatmul.mubr.msk.f32.vlgmr.msra.gmra.mrb[56].mxu1 %vm3497_vm2, %v9711_v42  ;;  %8354 = vmatprep.mubr.msk.f32.mxu0 %vm8925_vm0, %v8926_v11 }
 0x144   :  { %8359 = vmatprep.mubr.msk.f32.mxu1 %vm8925_vm0, %v8926_v11 }
 0x146   :  { %v2023_v15 = vpop.f32.mrb[26].mxu0 }
 0x147   :  { %v2093_v16 = vpop.f32.mrb[26].mxu1  ;;  %v8070_v17 = vpop.f32.mrb[27].mxu0  ;;  %8353 = vmatpush3.xpose.msk.msra.mxu0 %vm3497_vm2, %v2023_v15 }
 0x148   :  { %8358 = vmatpush3.xpose.msk.msra.mxu1 %vm3497_vm2, %v2093_v16  ;;  %v8081_v19 = vpop.f32.mrb[27].mxu1  ;;  %8362 = vmatprep.subr.mxu0 %v8926_v11 }
 0x149   :  { %8367 = vmatprep.subr.mxu1 %v8926_v11 }
 0x14a   :  { %8355 = vmatmul.mubr.msk.f32.vlgmr.msra.gmra.mrb[58].mxu0 %vm3497_vm2, %v9713_v44 }
 0x14b   :  { %8360 = vmatmul.mubr.msk.f32.vlgmr.msra.gmra.mrb[58].mxu1 %vm3497_vm2, %v9715_v46  ;;  %8364 = vmatprep.mubr.msk.f32.mxu0 %vm8925_vm0, %v8926_v11 }
 0x14c   :  { %8369 = vmatprep.mubr.msk.f32.mxu1 %vm8925_vm0, %v8926_v11 }
 0x14e   :  { %v2163_v20 = vpop.f32.mrb[28].mxu0 }
 0x14f   :  { %v2233_v21 = vpop.f32.mrb[28].mxu1  ;;  %v8092_v22 = vpop.f32.mrb[29].mxu0  ;;  %8363 = vmatpush3.xpose.msk.msra.mxu0 %vm3497_vm2, %v2163_v20 }
 0x150   :  { %8368 = vmatpush3.xpose.msk.msra.mxu1 %vm3497_vm2, %v2233_v21  ;;  %v8103_v23 = vpop.f32.mrb[29].mxu1  ;;  %8372 = vmatprep.subr.mxu0 %v8926_v11 }
 0x151   :  { %8377 = vmatprep.subr.mxu1 %v8926_v11 }
 0x152   :  { %8365 = vmatmul.mubr.msk.f32.vlgmr.msra.gmra.mrb[60].mxu0 %vm3497_vm2, %v9717_v48 }
 0x153   :  { %8370 = vmatmul.mubr.msk.f32.vlgmr.msra.gmra.mrb[60].mxu1 %vm3497_vm2, %v9719_v50  ;;  %8374 = vmatprep.mubr.msk.f32.mxu0 %vm8925_vm0, %v8926_v11 }
 0x154   :  { %8379 = vmatprep.mubr.msk.f32.mxu1 %vm8925_vm0, %v8926_v11 }
 0x156   :  { %v2303_v24 = vpop.f32.mrb[30].mxu0 }
 0x157   :  { %v2373_v25 = vpop.f32.mrb[30].mxu1  ;;  %v8114_v26 = vpop.f32.mrb[31].mxu0  ;;  %8373 = vmatpush3.xpose.msk.msra.mxu0 %vm3497_vm2, %v2303_v24 }
 0x158   :  { %8378 = vmatpush3.xpose.msk.msra.mxu1 %vm3497_vm2, %v2373_v25  ;;  %v8125_v3 = vpop.f32.mrb[31].mxu1  ;;  %8382 = vmatprep.subr.mxu0 %v8926_v11 }
 0x159   :  { %8387 = vmatprep.subr.mxu1 %v8926_v11 }
 0x15a   :  { %8375 = vmatmul.mubr.msk.f32.vlgmr.msra.gmra.mrb[62].mxu0 %vm3497_vm2, %v9721_v53 }
 0x15b   :  { %8380 = vmatmul.mubr.msk.f32.vlgmr.msra.gmra.mrb[62].mxu1 %vm3497_vm2, %v9723_v55  ;;  %8384 = vmatprep.mubr.msk.f32.mxu0 %vm8925_vm0, %v8926_v11 }
 0x15c   :  { %8389 = vmatprep.mubr.msk.f32.mxu1 %vm8925_vm0, %v8926_v11 }
 0x15e   :  { %v2443_v18 = vpop.f32.mrb[32].mxu0 }
 0x15f   :  { %v8136_v27 = vpop.f32.mrb[33].mxu0  ;;  %8383 = vmatpush3.msra.mxu0 %v2443_v18  ;;  %v2513_v28 = vpop.f32.mrb[32].mxu1 }
 0x160   :  { %v8147_v29 = vpop.f32.mrb[33].mxu1  ;;  %8388 = vmatpush3.msra.mxu1 %v2513_v28  ;;  %8392 = vmatprep.subr.mxu0 %v8926_v11 }
 0x161   :  { %8397 = vmatprep.subr.mxu1 %v8926_v11 }
 0x166   :  { %v9817_v30 = vpop.f32.mrb[34].mxu0 }
 0x167   :  { %v8158_v31 = vpop.f32.mrb[35].mxu0  ;;  %v9819_v32 = vpop.f32.mrb[34].mxu1 }
 0x168   :  { %v8169_v33 = vpop.f32.mrb[35].mxu1 }
 0x16e   :  { %v9821_v34 = vpop.f32.mrb[36].mxu0 }
 0x16f   :  { %v8180_v35 = vpop.f32.mrb[37].mxu0  ;;  %v9823_v36 = vpop.f32.mrb[36].mxu1 }
 0x170   :  { %v8191_v37 = vpop.f32.mrb[37].mxu1 }
 0x176   :  { %v9825_v51 = vpop.f32.mrb[38].mxu0 }
 0x177   :  { %v8202_v38 = vpop.f32.mrb[39].mxu0  ;;  %v9827_v39 = vpop.f32.mrb[38].mxu1 }
 0x178   :  { %v8213_v40 = vpop.f32.mrb[39].mxu1 }
 0x17e   :  { %v9829_v41 = vpop.f32.mrb[40].mxu0 }
 0x17f   :  { %v9831_v42 = vpop.f32.mrb[40].mxu1  ;;  %v8224_v43 = vpop.f32.mrb[41].mxu0 }
 0x180   :  { %v8235_v44 = vpop.f32.mrb[41].mxu1 }
 0x186   :  { %v9833_v45 = vpop.f32.mrb[42].mxu0 }
 0x187   :  { %v9835_v46 = vpop.f32.mrb[42].mxu1  ;;  %v8246_v47 = vpop.f32.mrb[43].mxu0 }
 0x188   :  { %v8257_v48 = vpop.f32.mrb[43].mxu1 }
 0x18e   :  { %v9837_v49 = vpop.f32.mrb[44].mxu0 }
 0x18f   :  { %v9839_v50 = vpop.f32.mrb[44].mxu1  ;;  %v8268_v52 = vpop.f32.mrb[45].mxu0 }
 0x190   :  { %v8279_v53 = vpop.f32.mrb[45].mxu1 }
 0x196   :  { %v9841_v54 = vpop.f32.mrb[46].mxu0 }
 0x197   :  { %v9843_v55 = vpop.f32.mrb[46].mxu1  ;;  %v8290_v56 = vpop.f32.mrb[47].mxu0 }
 0x198   :  { %v8301_v57 = vpop.f32.mrb[47].mxu1 }
 0x1f5   :  { %v9845_v58 = vpop.f32.mrb[48].mxu0 }
 0x1f6   :  { %v9847_v59 = vpop.f32.mrb[48].mxu1  ;;  %v8306_v60 = vpop.f32.mrb[49].mxu0  ;;  %v4715_v61 = vsel %vm4714_vm3, %v9845_v58, -inf }
 0x1f7   :  { %v8311_v62 = vpop.f32.mrb[49].mxu1  ;;  %4716 = vmax.xlane.f32.xlu0 %v4715_v61  ;;  %v4718_v63 = vsel %vm4714_vm3, %v9847_v59, -inf }
 0x1fb   :  { %4719 = vmax.xlane.f32.xlu0 %v4718_v63 }
 0x1fd   :  { %v9853_v0 = vpop.f32.mrb[50].mxu0 }
 0x1fe   :  { %v9855_v1 = vpop.f32.mrb[50].mxu1  ;;  %v8316_v2 = vpop.f32.mrb[51].mxu0  ;;  %v4721_v4 = vsel %vm4714_vm3, %v9853_v0, -inf }
 0x1ff   :  { %v8321_v5 = vpop.f32.mrb[51].mxu1  ;;  %4722 = vmax.xlane.f32.xlu1 %v4721_v4  ;;  %v4724_v6 = vsel %vm4714_vm3, %v9855_v1, -inf }
 0x203   :  { %4725 = vmax.xlane.f32.xlu1 %v4724_v6 }
 0x205   :  { %v9861_v7 = vpop.f32.mrb[52].mxu0 }
 0x206   :  { %v9863_v8 = vpop.f32.mrb[52].mxu1  ;;  %v8326_v9 = vpop.f32.mrb[53].mxu0  ;;  %v4727_v10 = vsel %vm4714_vm3, %v9861_v7, -inf }
 0x207   :  { %v8331_v12 = vpop.f32.mrb[53].mxu1  ;;  %v4730_v13 = vsel %vm4714_vm3, %v9863_v8, -inf  ;;  %4728 = vmax.xlane.f32.xlu0 %v4727_v10 }
 0x208   :  { %4731 = vmax.xlane.f32.xlu1 %v4730_v13 }
 0x20d   :  { %v9869_v14 = vpop.f32.mrb[54].mxu0 }
 0x20e   :  { %v9871_v15 = vpop.f32.mrb[54].mxu1  ;;  %v8336_v16 = vpop.f32.mrb[55].mxu0  ;;  %v4733_v17 = vsel %vm4714_vm3, %v9869_v14, -inf }
 0x20f   :  { %v8341_v19 = vpop.f32.mrb[55].mxu1  ;;  %v4736_v20 = vsel %vm4714_vm3, %v9871_v15, -inf  ;;  %4734 = vmax.xlane.f32.xlu0 %v4733_v17 }
 0x210   :  { %4737 = vmax.xlane.f32.xlu1 %v4736_v20 }
 0x215   :  { %v9877_v21 = vpop.f32.mrb[56].mxu0 }
 0x216   :  { %v9879_v22 = vpop.f32.mrb[56].mxu1  ;;  %v8346_v23 = vpop.f32.mrb[57].mxu0  ;;  %v4739_v24 = vsel %vm4714_vm3, %v9877_v21, -inf }
 0x217   :  { %v8351_v25 = vpop.f32.mrb[57].mxu1  ;;  %v4742_v26 = vsel %vm4714_vm3, %v9879_v22, -inf  ;;  %4740 = vmax.xlane.f32.xlu0 %v4739_v24 }
 0x218   :  { %4743 = vmax.xlane.f32.xlu1 %v4742_v26 }
 0x21d   :  { %v9885_v3 = vpop.f32.mrb[58].mxu0 }
 0x21e   :  { %v9887_v18 = vpop.f32.mrb[58].mxu1  ;;  %v8356_v27 = vpop.f32.mrb[59].mxu0  ;;  %v4745_v28 = vsel %vm4714_vm3, %v9885_v3, -inf }
 0x21f   :  { %v8361_v29 = vpop.f32.mrb[59].mxu1  ;;  %v4748_v31 = vsel %vm4714_vm3, %v9887_v18, -inf  ;;  %4746 = vmax.xlane.f32.xlu0 %v4745_v28 }
 0x220   :  { %4749 = vmax.xlane.f32.xlu1 %v4748_v31 }
 0x225   :  { %v9893_v33 = vpop.f32.mrb[60].mxu0 }
 0x226   :  { %v9895_v35 = vpop.f32.mrb[60].mxu1  ;;  %v8366_v37 = vpop.f32.mrb[61].mxu0  ;;  %v4751_v38 = vsel %vm4714_vm3, %v9893_v33, -inf }
 0x227   :  { %v8371_v40 = vpop.f32.mrb[61].mxu1  ;;  %v4754_v43 = vsel %vm4714_vm3, %v9895_v35, -inf  ;;  %4752 = vmax.xlane.f32.xlu0 %v4751_v38 }
 0x228   :  { %4755 = vmax.xlane.f32.xlu1 %v4754_v43 }
 0x22d   :  { %v9901_v44 = vpop.f32.mrb[62].mxu0 }
 0x22e   :  { %v9903_v47 = vpop.f32.mrb[62].mxu1  ;;  %v8376_v48 = vpop.f32.mrb[63].mxu0  ;;  %v4757_v52 = vsel %vm4714_vm3, %v9901_v44, -inf }
 0x22f   :  { %v8381_v53 = vpop.f32.mrb[63].mxu1  ;;  %v4760_v56 = vsel %vm4714_vm3, %v9903_v47, -inf  ;;  %4758 = vmax.xlane.f32.xlu0 %v4757_v52 }
 0x230   :  { %4761 = vmax.xlane.f32.xlu1 %v4760_v56 }
 0x284   :  { %v4717_v57 = vpop.xlane.xlu0 %4716 }
 0x285   :  { %v4763_v60 = vsub.f32 %v9845_v58, %v4717_v57 }
 0x287   :  { %v4779_v61 = vmul.f32 1.442695, %v4763_v60 }
 0x288   :  { %v4720_v62 = vpop.xlane.xlu0 %4719 }
 0x289   :  { %8836 = vpow2.f32 %v4779_v61  ;;  %v4764_v63 = vsub.f32 %v9847_v59, %v4720_v62 }
 0x28b   :  { %v4781_v2 = vmul.f32 1.442695, %v4764_v63 }
 0x28c   :  { %v4723_v4 = vpop.xlane.xlu1 %4722 }
 0x28d   :  { %8838 = vpow2.f32 %v4781_v2  ;;  %v4765_v5 = vsub.f32 %v9853_v0, %v4723_v4 }
 0x28f   :  { %v4783_v6 = vmul.f32 1.442695, %v4765_v5 }
 0x290   :  { %v4726_v9 = vpop.xlane.xlu1 %4725 }
 0x291   :  { %8840 = vpow2.f32 %v4783_v6  ;;  %v4766_v10 = vsub.f32 %v9855_v1, %v4726_v9 }
 0x293   :  { %v9913_v12 = vpop.eup %8836  ;;  %v4785_v13 = vmul.f32 1.442695, %v4766_v10 }
 0x294   :  { %v4729_v16 = vpop.xlane.xlu0 %4728  ;;  %v4811_v58 = vsel %vm4714_vm3, %v9913_v12, 0.0 }
 0x295   :  { %8842 = vpow2.f32 %v4785_v13  ;;  %v4732_v17 = vpop.xlane.xlu1 %4731  ;;  %v4767_v59 = vsub.f32 %v9861_v7, %v4729_v16  ;;  %4812 = vadd.xlane.f32.xlu0 %v4811_v58 }
 0x296   :  { %v4768_v19 = vsub.f32 %v9863_v8, %v4732_v17 }
 0x297   :  { %v9919_v0 = vpop.eup %8838  ;;  %v4787_v20 = vmul.f32 1.442695, %v4767_v59 }
 0x298   :  { %v4789_v23 = vmul.f32 1.442695, %v4768_v19  ;;  %v4814_v1 = vsel %vm4714_vm3, %v9919_v0, 0.0 }
 0x299   :  { %8844 = vpow2.f32 %v4787_v20  ;;  %4815 = vadd.xlane.f32.xlu1 %v4814_v1 }
 0x29a   :  { %8846 = vpow2.f32 %v4789_v23 }
 0x29b   :  { %v9923_v24 = vpop.eup %8840 }
 0x29c   :  { %v4735_v25 = vpop.xlane.xlu0 %4734  ;;  %v4817_v26 = vsel %vm4714_vm3, %v9923_v24, 0.0 }
 0x29d   :  { %v4738_v7 = vpop.xlane.xlu1 %4737  ;;  %v4769_v27 = vsub.f32 %v9869_v14, %v4735_v25  ;;  %4818 = vadd.xlane.f32.xlu0 %v4817_v26 }
 0x29e   :  { %v4770_v8 = vsub.f32 %v9871_v15, %v4738_v7 }
 0x29f   :  { %v9929_v28 = vpop.eup %8842  ;;  %v4791_v29 = vmul.f32 1.442695, %v4769_v27 }
 0x2a0   :  { %v4793_v31 = vmul.f32 1.442695, %v4770_v8  ;;  %v4820_v37 = vsel %vm4714_vm3, %v9929_v28, 0.0 }
 0x2a1   :  { %8848 = vpow2.f32 %v4791_v29  ;;  %4821 = vadd.xlane.f32.xlu1 %v4820_v37 }
 0x2a2   :  { %8850 = vpow2.f32 %v4793_v31 }
 0x2a3   :  { %v9933_v38 = vpop.eup %8844 }
 0x2a4   :  { %v9935_v40 = vpop.eup %8846  ;;  %v4741_v43 = vpop.xlane.xlu0 %4740  ;;  %v4823_v14 = vsel %vm4714_vm3, %v9933_v38, 0.0 }
 0x2a5   :  { %v4744_v48 = vpop.xlane.xlu1 %4743  ;;  %v4771_v15 = vsub.f32 %v9877_v21, %v4741_v43  ;;  %v4826_v52 = vsel %vm4714_vm3, %v9935_v40, 0.0  ;;  %4824 = vadd.xlane.f32.xlu0 %v4823_v14 }
 0x2a6   :  { %v4772_v53 = vsub.f32 %v9879_v22, %v4744_v48  ;;  %4827 = vadd.xlane.f32.xlu1 %v4826_v52 }
 0x2a7   :  { %v4795_v56 = vmul.f32 1.442695, %v4771_v15 }
 0x2a8   :  { %v4797_v57 = vmul.f32 1.442695, %v4772_v53 }
 0x2a9   :  { %8852 = vpow2.f32 %v4795_v56 }
 0x2aa   :  { %8854 = vpow2.f32 %v4797_v57 }
 0x2ab   :  { %v9943_v60 = vpop.eup %8848 }
 0x2ac   :  { %v9945_v61 = vpop.eup %8850  ;;  %v4747_v62 = vpop.xlane.xlu0 %4746  ;;  %v4829_v63 = vsel %vm4714_vm3, %v9943_v60, 0.0 }
 0x2ad   :  { %v4750_v21 = vpop.xlane.xlu1 %4749  ;;  %v4773_v2 = vsub.f32 %v9885_v3, %v4747_v62  ;;  %v4832_v4 = vsel %vm4714_vm3, %v9945_v61, 0.0  ;;  %4830 = vadd.xlane.f32.xlu0 %v4829_v63 }
 0x2ae   :  { %v4774_v22 = vsub.f32 %v9887_v18, %v4750_v21  ;;  %4833 = vadd.xlane.f32.xlu1 %v4832_v4 }
 0x2af   :  { %v4799_v5 = vmul.f32 1.442695, %v4773_v2 }
 0x2b0   :  { %v4801_v6 = vmul.f32 1.442695, %v4774_v22 }
 0x2b1   :  { %8856 = vpow2.f32 %v4799_v5 }
 0x2b2   :  { %8858 = vpow2.f32 %v4801_v6 }
 0x2b3   :  { %v9953_v9 = vpop.eup %8852 }
 0x2b4   :  { %v9955_v10 = vpop.eup %8854  ;;  %v4753_v13 = vpop.xlane.xlu0 %4752  ;;  %v4835_v16 = vsel %vm4714_vm3, %v9953_v9, 0.0 }
 0x2b5   :  { %v4756_v3 = vpop.xlane.xlu1 %4755  ;;  %v4775_v58 = vsub.f32 %v9893_v33, %v4753_v13  ;;  %v4838_v17 = vsel %vm4714_vm3, %v9955_v10, 0.0  ;;  %4836 = vadd.xlane.f32.xlu0 %v4835_v16 }
 0x2b6   :  { %v4776_v18 = vsub.f32 %v9895_v35, %v4756_v3  ;;  %4839 = vadd.xlane.f32.xlu1 %v4838_v17 }
 0x2b7   :  { %v4803_v59 = vmul.f32 1.442695, %v4775_v58 }
 0x2b8   :  { %v4805_v19 = vmul.f32 1.442695, %v4776_v18 }
 0x2b9   :  { %8860 = vpow2.f32 %v4803_v59 }
 0x2ba   :  { %8862 = vpow2.f32 %v4805_v19 }
 0x2bb   :  { %v9963_v20 = vpop.eup %8856 }
 0x2bc   :  { %v9965_v23 = vpop.eup %8858  ;;  %v4759_v1 = vpop.xlane.xlu0 %4758  ;;  %v4841_v25 = vsel %vm4714_vm3, %v9963_v20, 0.0 }
 0x2bd   :  { %v4762_v33 = vpop.xlane.xlu1 %4761  ;;  %v4777_v26 = vsub.f32 %v9901_v44, %v4759_v1  ;;  %v4844_v7 = vsel %vm4714_vm3, %v9965_v23, 0.0  ;;  %4842 = vadd.xlane.f32.xlu0 %v4841_v25 }
 0x2be   :  { %v4778_v35 = vsub.f32 %v9903_v47, %v4762_v33  ;;  %4845 = vadd.xlane.f32.xlu1 %v4844_v7 }
 0x2bf   :  { %v4807_v27 = vmul.f32 1.442695, %v4777_v26  ;;  %v124_v26 = vld [vmem:[%s10216_s4 + $0x8] sm:$0xf] }
 0x2c0   :  { %v4809_v8 = vmul.f32 1.442695, %v4778_v35 }
 0x2c1   :  { %8864 = vpow2.f32 %v4807_v27  ;;  %v125_v27 = vld [vmem:[%s10216_s4 + $0xc] sm:$0xf] }
 0x2c2   :  { %8866 = vpow2.f32 %v4809_v8 }
 0x2c3   :  { %v9973_v29 = vpop.eup %8860 }
 0x2c4   :  { %v9975_v31 = vpop.eup %8862  ;;  %v4847_v37 = vsel %vm4714_vm3, %v9973_v29, 0.0 }
 0x2c5   :  { %v4850_v44 = vsel %vm4714_vm3, %v9975_v31, 0.0  ;;  %4848 = vadd.xlane.f32.xlu0 %v4847_v37 }
 0x2c6   :  { %4851 = vadd.xlane.f32.xlu1 %v4850_v44 }
 0x2cb   :  { %v9981_v43 = vpop.eup %8864 }
 0x2cc   :  { %v9983_v47 = vpop.eup %8866  ;;  %v4853_v14 = vsel %vm4714_vm3, %v9981_v43, 0.0 }
 0x2cd   :  { %v4856_v48 = vsel %vm4714_vm3, %v9983_v47, 0.0  ;;  %4854 = vadd.xlane.f32.xlu0 %v4853_v14 }
 0x2ce   :  { %4857 = vadd.xlane.f32.xlu1 %v4856_v48  ;;  %v128_v48 = vld [vmem:[%s10216_s4 + $0x18] sm:$0xf] }
 0x322   :  { %v4813_v15 = vpop.xlane.xlu0 %4812 }
 0x323   :  { %8868 = vrcp.f32 %v4813_v15 }
 0x326   :  { %v4816_v52 = vpop.xlane.xlu1 %4815 }
 0x327   :  { %8870 = vrcp.f32 %v4816_v52  ;;  %v129_v52 = vld [vmem:[%s10216_s4 + $0x1c] sm:$0xf] }
 0x32a   :  { %v4819_v53 = vpop.xlane.xlu0 %4818 }
 0x32b   :  { %8872 = vrcp.f32 %v4819_v53 }
 0x32d   :  { %v8869_v56 = vpop.eup %8868 }
 0x32e   :  { %v4875_v57 = vmul.f32 %v8869_v56, %v9913_v12  ;;  %v4822_v62 = vpop.xlane.xlu1 %4821 }
 0x32f   :  { %8874 = vrcp.f32 %v4822_v62 }
 0x330   :  { %8385 = vmatmul.mubr.msk.f32.vlgmr.msra.gmra.mrb[64].mxu0 %vm4714_vm3, %v4875_v57 }
 0x331   :  { %v8871_v63 = vpop.eup %8870  ;;  %8393 = vmatpush3.msra.mxu0 %v9817_v30  ;;  %8394 = vmatprep.mubr.msk.f32.mxu0 %vm8925_vm0, %v8926_v11 }
 0x332   :  { %v4876_v21 = vmul.f32 %v8871_v63, %v9919_v0  ;;  %v4825_v2 = vpop.xlane.xlu0 %4824  ;;  %8402 = vmatprep.subr.mxu0 %v8926_v11 }
 0x333   :  { %v4828_v4 = vpop.xlane.xlu1 %4827  ;;  %8876 = vrcp.f32 %v4825_v2 }
 0x334   :  { %8878 = vrcp.f32 %v4828_v4  ;;  %8390 = vmatmul.mubr.msk.f32.vlgmr.msra.gmra.mrb[64].mxu1 %vm4714_vm3, %v4876_v21 }
 0x335   :  { %v8873_v12 = vpop.eup %8872  ;;  %8398 = vmatpush3.msra.mxu1 %v9819_v32  ;;  %8399 = vmatprep.mubr.msk.f32.mxu1 %vm8925_vm0, %v8926_v11 }
 0x336   :  { %v4877_v30 = vmul.f32 %v8873_v12, %v9923_v24  ;;  %8407 = vmatprep.subr.mxu1 %v8926_v11 }
 0x338   :  { %8395 = vmatmul.mubr.msk.f32.vlgmr.msra.gmra.mrb[66].mxu0 %vm4714_vm3, %v4877_v30 }
 0x339   :  { %v8875_v0 = vpop.eup %8874  ;;  %8403 = vmatpush3.msra.mxu0 %v9821_v34  ;;  %8404 = vmatprep.mubr.msk.f32.mxu0 %vm8925_vm0, %v8926_v11 }
 0x33a   :  { %v4878_v22 = vmul.f32 %v8875_v0, %v9929_v28  ;;  %v4831_v5 = vpop.xlane.xlu0 %4830  ;;  %8412 = vmatprep.subr.mxu0 %v8926_v11 }
 0x33b   :  { %v4834_v32 = vpop.xlane.xlu1 %4833  ;;  %8880 = vrcp.f32 %v4831_v5 }
 0x33c   :  { %8882 = vrcp.f32 %v4834_v32  ;;  %8400 = vmatmul.mubr.msk.f32.vlgmr.msra.gmra.mrb[66].mxu1 %vm4714_vm3, %v4878_v22 }
 0x33d   :  { %v8877_v24 = vpop.eup %8876  ;;  %8408 = vmatpush3.msra.mxu1 %v9823_v36  ;;  %8409 = vmatprep.mubr.msk.f32.mxu1 %vm8925_vm0, %v8926_v11 }
 0x33e   :  { %v8879_v34 = vpop.eup %8878  ;;  %v4879_v6 = vmul.f32 %v8877_v24, %v9933_v38  ;;  %8417 = vmatprep.subr.mxu1 %v8926_v11 }
 0x33f   :  { %v4880_v28 = vmul.f32 %v8879_v34, %v9935_v40 }
 0x340   :  { %8405 = vmatmul.mubr.msk.f32.vlgmr.msra.gmra.mrb[68].mxu0 %vm4714_vm3, %v4879_v6 }
 0x341   :  { %8410 = vmatmul.mubr.msk.f32.vlgmr.msra.gmra.mrb[68].mxu1 %vm4714_vm3, %v4880_v28  ;;  %8413 = vmatpush3.msra.mxu0 %v9825_v51 }
 0x342   :  { %8418 = vmatpush3.msra.mxu1 %v9827_v39  ;;  %v4837_v13 = vpop.xlane.xlu0 %4836  ;;  %8414 = vmatprep.mubr.msk.f32.mxu0 %vm8925_vm0, %v8926_v11 }
 0x343   :  { %v4840_v36 = vpop.xlane.xlu1 %4839  ;;  %8884 = vrcp.f32 %v4837_v13  ;;  %8419 = vmatprep.mubr.msk.f32.mxu1 %vm8925_vm0, %v8926_v11  ;;  %8422 = vmatprep.subr.mxu0 %v8926_v11 }
 0x344   :  { %8886 = vrcp.f32 %v4840_v36  ;;  %8427 = vmatprep.subr.mxu1 %v8926_v11 }
 0x345   :  { %v8881_v38 = vpop.eup %8880 }
 0x346   :  { %v8883_v40 = vpop.eup %8882  ;;  %v4881_v51 = vmul.f32 %v8881_v38, %v9943_v60 }
 0x347   :  { %v4882_v39 = vmul.f32 %v8883_v40, %v9945_v61 }
 0x348   :  { %8415 = vmatmul.mubr.msk.f32.vlgmr.msra.gmra.mrb[70].mxu0 %vm4714_vm3, %v4881_v51 }
 0x349   :  { %8420 = vmatmul.mubr.msk.f32.vlgmr.msra.gmra.mrb[70].mxu1 %vm4714_vm3, %v4882_v39  ;;  %8423 = vmatpush3.msra.mxu0 %v9829_v41 }
 0x34a   :  { %8428 = vmatpush3.msra.mxu1 %v9831_v42  ;;  %v4843_v16 = vpop.xlane.xlu0 %4842  ;;  %8424 = vmatprep.mubr.msk.f32.mxu0 %vm8925_vm0, %v8926_v11 }
 0x34b   :  { %v4846_v3 = vpop.xlane.xlu1 %4845  ;;  %8888 = vrcp.f32 %v4843_v16  ;;  %8429 = vmatprep.mubr.msk.f32.mxu1 %vm8925_vm0, %v8926_v11  ;;  %8432 = vmatprep.subr.mxu0 %v8926_v11 }
 0x34c   :  { %8890 = vrcp.f32 %v4846_v3  ;;  %8437 = vmatprep.subr.mxu1 %v8926_v11 }
 0x34d   :  { %v8885_v60 = vpop.eup %8884 }
 0x34e   :  { %v8887_v61 = vpop.eup %8886  ;;  %v4883_v41 = vmul.f32 %v8885_v60, %v9953_v9 }
 0x34f   :  { %v4884_v42 = vmul.f32 %v8887_v61, %v9955_v10 }
 0x350   :  { %8425 = vmatmul.mubr.msk.f32.vlgmr.msra.gmra.mrb[72].mxu0 %vm4714_vm3, %v4883_v41 }
 0x351   :  { %8430 = vmatmul.mubr.msk.f32.vlgmr.msra.gmra.mrb[72].mxu1 %vm4714_vm3, %v4884_v42  ;;  %8433 = vmatpush3.msra.mxu0 %v9833_v45 }
 0x352   :  { %8438 = vmatpush3.msra.mxu1 %v9835_v46  ;;  %v4849_v58 = vpop.xlane.xlu0 %4848  ;;  %8434 = vmatprep.mubr.msk.f32.mxu0 %vm8925_vm0, %v8926_v11 }
 0x353   :  { %v4852_v17 = vpop.xlane.xlu1 %4851  ;;  %8892 = vrcp.f32 %v4849_v58  ;;  %8439 = vmatprep.mubr.msk.f32.mxu1 %vm8925_vm0, %v8926_v11  ;;  %8442 = vmatprep.subr.mxu0 %v8926_v11 }
 0x354   :  { %8894 = vrcp.f32 %v4852_v17  ;;  %8447 = vmatprep.subr.mxu1 %v8926_v11 }
 0x355   :  { %v8889_v9 = vpop.eup %8888 }
 0x356   :  { %v8891_v10 = vpop.eup %8890  ;;  %v4885_v45 = vmul.f32 %v8889_v9, %v9963_v20 }
 0x357   :  { %v4886_v46 = vmul.f32 %v8891_v10, %v9965_v23 }
 0x358   :  { %8435 = vmatmul.mubr.msk.f32.vlgmr.msra.gmra.mrb[74].mxu0 %vm4714_vm3, %v4885_v45 }
 0x359   :  { %8440 = vmatmul.mubr.msk.f32.vlgmr.msra.gmra.mrb[74].mxu1 %vm4714_vm3, %v4886_v46  ;;  %8443 = vmatpush3.msra.mxu0 %v9837_v49 }
 0x35a   :  { %8448 = vmatpush3.msra.mxu1 %v9839_v50  ;;  %v4855_v18 = vpop.xlane.xlu0 %4854  ;;  %8444 = vmatprep.mubr.msk.f32.mxu0 %vm8925_vm0, %v8926_v11 }
 0x35b   :  { %v4858_v59 = vpop.xlane.xlu1 %4857  ;;  %8896 = vrcp.f32 %v4855_v18  ;;  %8449 = vmatprep.mubr.msk.f32.mxu1 %vm8925_vm0, %v8926_v11  ;;  %8452 = vmatprep.subr.mxu0 %v8926_v11 }
 0x35c   :  { %8898 = vrcp.f32 %v4858_v59  ;;  %8457 = vmatprep.subr.mxu1 %v8926_v11 }
 0x35d   :  { %v8893_v19 = vpop.eup %8892 }
 0x35e   :  { %v8895_v20 = vpop.eup %8894  ;;  %v4887_v49 = vmul.f32 %v8893_v19, %v9973_v29 }
 0x35f   :  { %v4888_v50 = vmul.f32 %v8895_v20, %v9975_v31  ;;  %v126_v31 = vld [vmem:[%s10216_s4 + $0x10] sm:$0xf] }
 0x360   :  { %8445 = vmatmul.mubr.msk.f32.vlgmr.msra.gmra.mrb[76].mxu0 %vm4714_vm3, %v4887_v49 }
 0x361   :  { %8450 = vmatmul.mubr.msk.f32.vlgmr.msra.gmra.mrb[76].mxu1 %vm4714_vm3, %v4888_v50  ;;  %8453 = vmatpush3.msra.mxu0 %v9841_v54  ;;  %v122_v54 = vld [vmem:[%s10216_s4] sm:$0xf] }
 0x362   :  { %8458 = vmatpush3.msra.mxu1 %v9843_v55  ;;  %8454 = vmatprep.mubr.msk.f32.mxu0 %vm8925_vm0, %v8926_v11  ;;  %v123_v55 = vld [vmem:[%s10216_s4 + $0x4] sm:$0xf] }
 0x363   :  { %8459 = vmatprep.mubr.msk.f32.mxu1 %vm8925_vm0, %v8926_v11  ;;  %8462 = vmatprep.subr.mxu0 %v8926_v11 }
 0x364   :  { %8467 = vmatprep.subr.mxu1 %v8926_v11 }
 0x365   :  { %v8897_v23 = vpop.eup %8896 }
 0x366   :  { %v8899_v1 = vpop.eup %8898  ;;  %v4889_v25 = vmul.f32 %v8897_v23, %v9981_v43  ;;  %v127_v43 = vld [vmem:[%s10216_s4 + $0x14] sm:$0xf] }
 0x367   :  { %v4890_v33 = vmul.f32 %v8899_v1, %v9983_v47 }
 0x368   :  { %8455 = vmatmul.mubr.msk.f32.vlgmr.msra.gmra.mrb[78].mxu0 %vm4714_vm3, %v4889_v25 }
 0x369   :  { %8460 = vmatmul.mubr.msk.f32.vlgmr.msra.gmra.mrb[78].mxu1 %vm4714_vm3, %v4890_v33  ;;  %8464 = vmatprep.mubr.msk.f32.mxu0 %vm8925_vm0, %v8926_v11 }
 0x36a   :  { %8469 = vmatprep.mubr.msk.f32.mxu1 %vm8925_vm0, %v8926_v11  ;;  %8463 = vmatpush3.msk.msra.mxu0 %vm6062_vm4, %v122_v54 }
 0x36b   :  { %8472 = vmatprep.subr.mxu0 %v8926_v11  ;;  %8468 = vmatpush3.msk.msra.mxu1 %vm6062_vm4, %v123_v55 }
 0x36c   :  { %8477 = vmatprep.subr.mxu1 %v8926_v11 }
 0x403   :  { %v4960_v7 = vpop.f32.mrb[64].mxu0 }
 0x404   :  { %v8386_v35 = vpop.f32.mrb[65].mxu0  ;;  %8465 = vmatmul.mubr.msk.f32.vlgmr.msra.gmra.mrb[80].mxu0 %vm3497_vm2, %v4960_v7 }
 0x405   :  { %8473 = vmatpush3.msk.msra.mxu0 %vm6062_vm4, %v124_v26  ;;  %8474 = vmatprep.mubr.msk.f32.mxu0 %vm8925_vm0, %v8926_v11 }
 0x406   :  { %8482 = vmatprep.subr.mxu0 %v8926_v11 }
 0x407   :  { %v5033_v8 = vpop.f32.mrb[64].mxu1 }
 0x408   :  { %v8391_v29 = vpop.f32.mrb[65].mxu1  ;;  %8470 = vmatmul.mubr.msk.f32.vlgmr.msra.gmra.mrb[80].mxu1 %vm3497_vm2, %v5033_v8  ;;  %v7437_v8 = vld [vmem:[%s10217_s5] ss:$0 sm:$0xff]  ;;  %s8927_s5 = smov [#allocation2]  }
 0x409   :  { %8478 = vmatpush3.msk.msra.mxu1 %vm6062_vm4, %v125_v27  ;;  %8479 = vmatprep.mubr.msk.f32.mxu1 %vm8925_vm0, %v8926_v11  ;;  %s7298_s26 = sshll.u32 %s8927_s5, 4  ;;  %s7299_s26 = int_to_ptr.vmem [resolvable:$true] %s7298_s26 }
 0x40a   :  { %8487 = vmatprep.subr.mxu1 %v8926_v11  ;;  %s8900_s2 = scalar_lea.vmem %s7299_s26, 256  ;;  %p8905_p1 = scmp.lt.s32.totalorder %s7299_s26, %s7299_s26 }
 0x40b   :  { %v5106_v37 = vpop.f32.mrb[66].mxu0  ;;  %p8901_p0 = scmp.ne.s32.totalorder %s7299_s26, %s8900_s2  ;;  %p8906_p2 = scmp.lt.s32.totalorder %s8900_s2, %s8900_s2 }
 0x40c   :  { %v8396_v44 = vpop.f32.mrb[67].mxu0  ;;  %8475 = vmatmul.mubr.msk.f32.vlgmr.msra.gmra.mrb[82].mxu0 %vm3497_vm2, %v5106_v37 }
 0x40d   :  { %8483 = vmatpush3.msk.msra.mxu0 %vm6062_vm4, %v126_v31  ;;  %8484 = vmatprep.mubr.msk.f32.mxu0 %vm8925_vm0, %v8926_v11  ;;  %p8907_p3 = por %p8906_p2, %p8905_p1 }
 0x40e   :  { %8492 = vmatprep.subr.mxu0 %v8926_v11 }
 0x40f   :  { %v5179_v47 = vpop.f32.mrb[66].mxu1  ;;  %p8908_p4 = pnand %p8907_p3, %p8901_p0 }
 0x410   :  { %v8401_v14 = vpop.f32.mrb[67].mxu1  ;;  %8480 = vmatmul.mubr.msk.f32.vlgmr.msra.gmra.mrb[82].mxu1 %vm3497_vm2, %v5179_v47 }
 0x411   :  { %8488 = vmatpush3.msk.msra.mxu1 %vm6062_vm4, %v127_v43  ;;  %8489 = vmatprep.mubr.msk.f32.mxu1 %vm8925_vm0, %v8926_v11 }
 0x412   :  { %8497 = vmatprep.subr.mxu1 %v8926_v11 }
 0x413   :  { %v5252_v15 = vpop.f32.mrb[68].mxu0 }
 0x414   :  { %v5325_v53 = vpop.f32.mrb[68].mxu1  ;;  %v8406_v56 = vpop.f32.mrb[69].mxu0  ;;  %8485 = vmatmul.mubr.msk.f32.vlgmr.msra.gmra.mrb[84].mxu0 %vm3497_vm2, %v5252_v15 }
 0x415   :  { %v8411_v57 = vpop.f32.mrb[69].mxu1  ;;  %8490 = vmatmul.mubr.msk.f32.vlgmr.msra.gmra.mrb[84].mxu1 %vm3497_vm2, %v5325_v53  ;;  %8493 = vmatpush3.msk.msra.mxu0 %vm6062_vm4, %v128_v48 }
 0x416   :  { %8494 = vmatprep.mubr.msk.f32.mxu0 %vm8925_vm0, %v8926_v11  ;;  %8498 = vmatpush3.msk.msra.mxu1 %vm6062_vm4, %v129_v52 }
 0x417   :  { %8499 = vmatprep.mubr.msk.f32.mxu1 %vm8925_vm0, %v8926_v11  ;;  %8502 = vmatprep.subr.mxu0 %v8926_v11 }
 0x418   :  { %8507 = vmatprep.subr.mxu1 %v8926_v11 }
 0x41b   :  { %v5398_v62 = vpop.f32.mrb[70].mxu0 }
 0x41c   :  { %v5471_v63 = vpop.f32.mrb[70].mxu1  ;;  %v8416_v21 = vpop.f32.mrb[71].mxu0  ;;  %8495 = vmatmul.mubr.msk.f32.vlgmr.msra.gmra.mrb[86].mxu0 %vm3497_vm2, %v5398_v62 }
 0x41d   :  { %v8421_v2 = vpop.f32.mrb[71].mxu1  ;;  %8500 = vmatmul.mubr.msk.f32.vlgmr.msra.gmra.mrb[86].mxu1 %vm3497_vm2, %v5471_v63  ;;  %8503 = vmatpush3.msk.msra.mxu0 %vm6062_vm4, %v122_v54 }
 0x41e   :  { %8504 = vmatprep.mubr.msk.f32.mxu0 %vm8925_vm0, %v8926_v11  ;;  %8508 = vmatpush3.msk.msra.mxu1 %vm6062_vm4, %v123_v55 }
 0x41f   :  { %8509 = vmatprep.mubr.msk.f32.mxu1 %vm8925_vm0, %v8926_v11  ;;  %8512 = vmatprep.subr.mxu0 %v8926_v11 }
 0x420   :  { %8517 = vmatprep.subr.mxu1 %v8926_v11 }
 0x423   :  { %v5544_v4 = vpop.f32.mrb[72].mxu0 }
 0x424   :  { %v5617_v12 = vpop.f32.mrb[72].mxu1  ;;  %v8426_v30 = vpop.f32.mrb[73].mxu0  ;;  %8505 = vmatmul.mubr.msk.f32.vlgmr.msra.gmra.mrb[88].mxu0 %vm3497_vm2, %v5544_v4 }
 0x425   :  { %v8431_v0 = vpop.f32.mrb[73].mxu1  ;;  %8510 = vmatmul.mubr.msk.f32.vlgmr.msra.gmra.mrb[88].mxu1 %vm3497_vm2, %v5617_v12  ;;  %8513 = vmatpush3.msk.msra.mxu0 %vm6062_vm4, %v124_v26 }
 0x426   :  { %8514 = vmatprep.mubr.msk.f32.mxu0 %vm8925_vm0, %v8926_v11  ;;  %8518 = vmatpush3.msk.msra.mxu1 %vm6062_vm4, %v125_v27 }
 0x427   :  { %8519 = vmatprep.mubr.msk.f32.mxu1 %vm8925_vm0, %v8926_v11  ;;  %8522 = vmatprep.subr.mxu0 %v8926_v11 }
 0x428   :  { %8527 = vmatprep.subr.mxu1 %v8926_v11 }
 0x42b   :  { %v5690_v22 = vpop.f32.mrb[74].mxu0 }
 0x42c   :  { %v5763_v5 = vpop.f32.mrb[74].mxu1  ;;  %v8436_v32 = vpop.f32.mrb[75].mxu0  ;;  %8515 = vmatmul.mubr.msk.f32.vlgmr.msra.gmra.mrb[90].mxu0 %vm3497_vm2, %v5690_v22 }
 0x42d   :  { %v8441_v24 = vpop.f32.mrb[75].mxu1  ;;  %8520 = vmatmul.mubr.msk.f32.vlgmr.msra.gmra.mrb[90].mxu1 %vm3497_vm2, %v5763_v5  ;;  %8523 = vmatpush3.msk.msra.mxu0 %vm6062_vm4, %v126_v31 }
 0x42e   :  { %8524 = vmatprep.mubr.msk.f32.mxu0 %vm8925_vm0, %v8926_v11  ;;  %8528 = vmatpush3.msk.msra.mxu1 %vm6062_vm4, %v127_v43 }
 0x42f   :  { %8529 = vmatprep.mubr.msk.f32.mxu1 %vm8925_vm0, %v8926_v11  ;;  %8532 = vmatprep.subr.mxu0 %v8926_v11 }
 0x430   :  { %8537 = vmatprep.subr.mxu1 %v8926_v11 }
 0x433   :  { %v5836_v34 = vpop.f32.mrb[76].mxu0 }
 0x434   :  { %v5909_v6 = vpop.f32.mrb[76].mxu1  ;;  %v8446_v28 = vpop.f32.mrb[77].mxu0  ;;  %8525 = vmatmul.mubr.msk.f32.vlgmr.msra.gmra.mrb[92].mxu0 %vm3497_vm2, %v5836_v34 }
 0x435   :  { %v8451_v13 = vpop.f32.mrb[77].mxu1  ;;  %8530 = vmatmul.mubr.msk.f32.vlgmr.msra.gmra.mrb[92].mxu1 %vm3497_vm2, %v5909_v6  ;;  %8533 = vmatpush3.msk.msra.mxu0 %vm6062_vm4, %v128_v48 }
 0x436   :  { %8534 = vmatprep.mubr.msk.f32.mxu0 %vm8925_vm0, %v8926_v11  ;;  %8538 = vmatpush3.msk.msra.mxu1 %vm6062_vm4, %v129_v52 }
 0x437   :  { %8539 = vmatprep.mubr.msk.f32.mxu1 %vm8925_vm0, %v8926_v11 }
 0x43b   :  { %v5982_v36 = vpop.f32.mrb[78].mxu0 }
 0x43c   :  { %v6055_v38 = vpop.f32.mrb[78].mxu1  ;;  %v8456_v40 = vpop.f32.mrb[79].mxu0  ;;  %8535 = vmatmul.mubr.msk.f32.vlgmr.msra.gmra.mrb[94].mxu0 %vm3497_vm2, %v5982_v36 }
 0x43d   :  { %v8461_v51 = vpop.f32.mrb[79].mxu1  ;;  %8540 = vmatmul.mubr.msk.f32.vlgmr.msra.gmra.mrb[94].mxu1 %vm3497_vm2, %v6055_v38 }
 0x4d7   :  { %v6132_v39 = vpop.f32.mrb[80].mxu0 }
 0x4d8   :  { %v8466_v16 = vpop.f32.mrb[81].mxu0  ;;  %v7252_v60 = vsel %vm130_vm1, %v6132_v39, 0.0 }
 0x4db   :  { %v6208_v3 = vpop.f32.mrb[80].mxu1 }
 0x4dc   :  { %v7253_v61 = vsel %vm130_vm1, %v6208_v3, 0.0  ;;  %v8471_v41 = vpop.f32.mrb[81].mxu1 }
 0x4dd   :  { %v7254_v42 = vadd.f32 %v7253_v61, %v7252_v60 }
 0x4df   :  { %v6284_v58 = vpop.f32.mrb[82].mxu0 }
 0x4e0   :  { %v7255_v11 = vsel %vm130_vm1, %v6284_v58, 0.0  ;;  %v8476_v17 = vpop.f32.mrb[83].mxu0 }
 0x4e1   :  { %v7256_v9 = vadd.f32 %v7255_v11, %v7254_v42 }
 0x4e3   :  { %v6360_v10 = vpop.f32.mrb[82].mxu1 }
 0x4e4   :  { %v7257_v45 = vsel %vm130_vm1, %v6360_v10, 0.0  ;;  %v8481_v46 = vpop.f32.mrb[83].mxu1 }
 0x4e5   :  { %v7258_v18 = vadd.f32 %v7257_v45, %v7256_v9 }
 0x4e7   :  { %v6436_v59 = vpop.f32.mrb[84].mxu0 }
 0x4e8   :  { %v7259_v19 = vsel %vm130_vm1, %v6436_v59, 0.0  ;;  %v6512_v20 = vpop.f32.mrb[84].mxu1  ;;  %v8486_v49 = vpop.f32.mrb[85].mxu0 }
 0x4e9   :  { %v7260_v50 = vadd.f32 %v7259_v19, %v7258_v18  ;;  %v8491_v23 = vpop.f32.mrb[85].mxu1  ;;  %v7261_v1 = vsel %vm130_vm1, %v6512_v20, 0.0 }
 0x4eb   :  { %v7262_v25 = vadd.f32 %v7261_v1, %v7260_v50 }
 0x4ef   :  { %v6588_v33 = vpop.f32.mrb[86].mxu0 }
 0x4f0   :  { %v7263_v54 = vsel %vm130_vm1, %v6588_v33, 0.0  ;;  %v6664_v55 = vpop.f32.mrb[86].mxu1  ;;  %v8496_v26 = vpop.f32.mrb[87].mxu0 }
 0x4f1   :  { %v7264_v7 = vadd.f32 %v7263_v54, %v7262_v25  ;;  %v8501_v35 = vpop.f32.mrb[87].mxu1  ;;  %v7265_v27 = vsel %vm130_vm1, %v6664_v55, 0.0 }
 0x4f3   :  { %v7266_v29 = vadd.f32 %v7265_v27, %v7264_v7 }
 0x4f5   :  { %v7289_v31 = vadd.f32 %v7437_v8, %v7266_v29 }
 0x4f7   :  { %7291 = vst.msk [vmem:[#allocation2] sm:$0xff] %vm130_vm1, %v7289_v31  ;;  %v6737_v37 = vpop.f32.mrb[88].mxu0 }
 0x4f8   :  { %v7267_v44 = vsel %vm130_vm1, %v6737_v37, 0.0  ;;  %v6810_v43 = vpop.f32.mrb[88].mxu1  ;;  %v8506_v47 = vpop.f32.mrb[89].mxu0 }
 0x4f9   :  { %v7268_v14 = vsel %vm130_vm1, %v6810_v43, 0.0  ;;  %v8511_v48 = vpop.f32.mrb[89].mxu1 }
 0x4fa   :  { %v7269_v15 = vadd.f32 %v7268_v14, %v7267_v44 }
 0x4ff   :  { %v6883_v52 = vpop.f32.mrb[90].mxu0 }
 0x500   :  { %v7270_v53 = vsel %vm130_vm1, %v6883_v52, 0.0  ;;  %v6956_v56 = vpop.f32.mrb[90].mxu1  ;;  %v8516_v57 = vpop.f32.mrb[91].mxu0 }
 0x501   :  { %v7271_v62 = vadd.f32 %v7270_v53, %v7269_v15  ;;  %v8521_v63 = vpop.f32.mrb[91].mxu1  ;;  %v7272_v21 = vsel %vm130_vm1, %v6956_v56, 0.0 }
 0x503   :  { %v7273_v2 = vadd.f32 %v7272_v21, %v7271_v62 }
 0x507   :  { %v7029_v4 = vpop.f32.mrb[92].mxu0 }
 0x508   :  { %v7274_v12 = vsel %vm130_vm1, %v7029_v4, 0.0  ;;  %v7102_v30 = vpop.f32.mrb[92].mxu1  ;;  %v8526_v0 = vpop.f32.mrb[93].mxu0 }
 0x509   :  { %v7275_v22 = vadd.f32 %v7274_v12, %v7273_v2  ;;  %v8531_v5 = vpop.f32.mrb[93].mxu1  ;;  %v7276_v32 = vsel %vm130_vm1, %v7102_v30, 0.0 }
 0x50b   :  { %v7277_v24 = vadd.f32 %v7276_v32, %v7275_v22 }
 0x50f   :  { %v7175_v34 = vpop.f32.mrb[94].mxu0 }
 0x510   :  { %v7278_v6 = vsel %vm130_vm1, %v7175_v34, 0.0  ;;  %v7248_v28 = vpop.f32.mrb[94].mxu1  ;;  %v8536_v13 = vpop.f32.mrb[95].mxu0 }
 0x511   :  { %v7279_v36 = vadd.f32 %v7278_v6, %v7277_v24  ;;  %v8541_v38 = vpop.f32.mrb[95].mxu1  ;;  %v7280_v40 = vsel %vm130_vm1, %v7248_v28, 0.0 }
 0x513   :  { %v7281_v51 = vadd.f32 %v7280_v40, %v7279_v36 }
 0x515   :  { %v7290_v39 = vadd.f32 %v7437_v8, %v7281_v51 }
 0x517   :  { %7292 = vst.msk [vmem:[#allocation2 + $0x8] sm:$0xff] %vm130_vm1, %v7290_v39 }
 0x518   :  { %8911 = shalt.err (!%p8908_p4)
}
 0x519   :  { %s8912_s29 = scalar_lea.hbm %s10218_s6, 256 }
 0x51a   :  { %p8913_p5 = scmp.ne.s32.totalorder %s10218_s6, %s8912_s29  ;;  %p8916_p6 = scmp.lt.u32.totalorder %s8912_s29, %s10218_s6 }
 0x51c   :  { %p8918_p7 = pnand %p8916_p6, %p8913_p5 }
 0x51e   :  { %8921 = shalt.err (!%p8918_p7)
}
 0x51f   :  { %s8928_s10 = smov 128   ;;  %s8929_s11 = smov 8  }
 0x520   :  { %7304 = dma.vmem_to_hbm [thread:$0]  %s7299_s26, 256, %s10218_s6, [#allocation3], %s8928_s10, %s8928_s10, %s8929_s11  }
 0x521   :  { %8922 = dma.done.wait [#allocation3], 256  }
 0x522   :  { %8923 = vsyncadd [#allocation3], 4294967040 }
 0x523   :  { %7308 = vsyncpa [#allocation3], 1 }

</bundles_post_ra>
